<compile_context>
chip_gen: v5e
topology: v5e:2x2
jax: 0.10.0
libtpu: 0.0.40
codegen_flags: <defaults>
</compile_context>

<pallas_src>
import functools
import numpy as np
import jax
import jax.numpy as jnp
from jax import lax
from jax.experimental import pallas as pl
from jax.experimental.pallas import tpu as pltpu


def _bionet_kernel(x_ref, bias_ref, at_ref, o_ref, *, iterations, leak):
    """Fixed-point iteration, batch-major: xhat <- leakyReLU(xhat @ A^T + bIn)."""
    A_T = at_ref[...]                       # (size, size) = A transposed
    bIn = x_ref[...] + bias_ref[...]        # (batch, size) + (1, size)

    def step(xh):
        xnew = jnp.dot(xh, A_T, preferred_element_type=jnp.float32) + bIn
        return jnp.maximum(xnew, leak * xnew)   # leakyReLU (0 < leak < 1)

    xhat = jnp.zeros_like(bIn)

    # --- phase 1: iterations i = 0..40 — pure matmul chain, no checks -------
    n_phase1 = min(iterations, 41)
    xhat = lax.fori_loop(0, n_phase1, lambda i, xh: step(xh), xhat, unroll=True)

    if iterations > 41:
        # --- iteration i = 41: take the snapshot, then step ------------------
        xhat_before = xhat
        xhat = step(xhat)

        if iterations > 42:
            # --- phase 2: iterations i = 42..N-1 with early stop --------------
            def cond(carry):
                i, xh, xhb = carry
                diff = jnp.sum(jnp.abs(xh - xhb))
                return jnp.logical_and(i < iterations, diff >= 1e-6)

            def body(carry):
                i, xh, _ = carry
                return i + 1, step(xh), xh

            _, xhat, _ = lax.while_loop(
                cond, body, (jnp.int32(42), xhat, xhat_before))

    o_ref[...] = xhat


def bionet_forward(x, a_dense, bias, *, iterations, leak):
    """x: (batch, size) -> (batch, size), matching bionetworkFunction.forward."""
    batch, size = x.shape
    a_t = jnp.transpose(a_dense)            # one-time transpose, outside the loop
    bias_row = jnp.reshape(bias, (1, size)) # broadcast over batch inside kernel
    kernel = functools.partial(_bionet_kernel, iterations=iterations, leak=leak)
    return pl.pallas_call(
        kernel,
        out_shape=jax.ShapeDtypeStruct((batch, size), jnp.float32),
        in_specs=[pl.BlockSpec(memory_space=pltpu.MemorySpace.VMEM),
                  pl.BlockSpec(memory_space=pltpu.MemorySpace.VMEM),
                  pl.BlockSpec(memory_space=pltpu.MemorySpace.VMEM)],
        out_specs=pl.BlockSpec(memory_space=pltpu.MemorySpace.VMEM),
    )(x.astype(jnp.float32), bias_row.astype(jnp.float32),
      a_t.astype(jnp.float32))


def dense_A(weights, networkList, size):
    """Dense equivalent of scipy.sparse.csr_matrix((weights, networkList))."""
    A = np.zeros((size, size), dtype=np.float32)
    np.add.at(A, (networkList[0], networkList[1]), weights)   # CSR sums duplicates
    return A


def reference_forward(x, A, bias, iterations, leak):
    """Pure-numpy emulation of bionetworkFunction.forward (leakyReLU case)."""
    bIn = x.T + bias
    xhat = np.zeros_like(bIn)
    xhatBefore = xhat.copy()
    for i in range(iterations):
        if i > 40:
            if i > 41:
                if np.sum(np.abs(xhat - xhatBefore)) < 1e-6:
                    break
            xhatBefore = xhat.copy()
        xhat = A.dot(xhat)
        xhat += bIn
        xhat = np.where(xhat >= 0.0, xhat, leak * xhat)
    return xhat.T


if __name__ == "__main__":
    SIZE, BATCH, N_EDGES = 64, 8, 192
    parameters = {"iterations": 60, "leak": 0.01, "clipping": 5.0}

    key = jax.random.PRNGKey(0)
    k_x, k_tgt, k_src, k_moa, k_w = jax.random.split(key, 5)

    # --- deterministic synthetic network (mirrors bionet.__init__ inputs) ---
    tgt = np.asarray(jax.random.randint(k_tgt, (N_EDGES,), 0, SIZE))
    src = np.asarray(jax.random.randint(k_src, (N_EDGES,), 0, SIZE))
    networkList = np.stack([tgt, src])                       # row0=target, row1=source
    activating = np.asarray(jax.random.uniform(k_moa, (N_EDGES,)) < 0.7)
    modeOfAction = np.stack([activating, ~activating])       # row1 = inhibition

    # --- initializeWeights() ---
    w_raw = np.asarray(0.1 + 0.1 * jax.random.uniform(k_w, (N_EDGES,)),
                       dtype=np.float32)
    weights = np.where(modeOfAction[1], -w_raw, w_raw).astype(np.float32)
    bias = 0.001 * np.ones((SIZE, 1), dtype=np.float32)
    for i in range(SIZE):
        affected = networkList[0, :] == i
        if np.any(affected) and np.all(weights[affected] < 0):
            bias[i] = 1.0

    A = dense_A(weights, networkList, SIZE)

    # --- forward ---
    x = jax.random.normal(k_x, (BATCH, SIZE), dtype=jnp.float32)
    out = bionet_forward(x, jnp.asarray(A), jnp.asarray(bias),
                         iterations=parameters["iterations"],
                         leak=parameters["leak"])
    out = jax.block_until_ready(out)

    # sanity check vs numpy reference of the original forward
    ref = reference_forward(np.asarray(x), A, bias,
                            parameters["iterations"], parameters["leak"])
    np.testing.assert_allclose(np.asarray(out), ref, rtol=1e-2, atol=1e-3)
    print("KERNEL_OK")
</pallas_src>

<mosaic_0001>
module attributes {stable_mosaic.version = 11 : i64} {
  func.func @_bionet_kernel(%arg0: memref<8x64xf32, #tpu.memory_space<vmem>>, %arg1: memref<1x64xf32, #tpu.memory_space<vmem>>, %arg2: memref<64x64xf32, #tpu.memory_space<vmem>>, %arg3: memref<8x64xf32, #tpu.memory_space<vmem>>) attributes {dimension_semantics = [], scalar_prefetch = 0 : i64, scratch_operands = 0 : i64, tpu.core_type = #tpu.core_type<tc>} {
    %c0 = arith.constant 0 : index
    %c0_0 = arith.constant 0 : index
    %0 = vector.load %arg2[%c0, %c0_0] : memref<64x64xf32, #tpu.memory_space<vmem>>, vector<64x64xf32>
    %c0_1 = arith.constant 0 : index
    %c0_2 = arith.constant 0 : index
    %1 = vector.load %arg0[%c0_1, %c0_2] : memref<8x64xf32, #tpu.memory_space<vmem>>, vector<8x64xf32>
    %c0_3 = arith.constant 0 : index
    %c0_4 = arith.constant 0 : index
    %2 = vector.load %arg1[%c0_3, %c0_4] : memref<1x64xf32, #tpu.memory_space<vmem>>, vector<1x64xf32>
    %3 = vector.broadcast %2 : vector<1x64xf32> to vector<8x64xf32>
    %4 = arith.addf %1, %3 : vector<8x64xf32>
    %cst = arith.constant 0.000000e+00 : f32
    %5 = vector.broadcast %cst : f32 to vector<8x64xf32>
    %c0_i32 = arith.constant 0 : i32
    %cst_5 = arith.constant dense<0.000000e+00> : vector<8x64xf32>
    %6 = tpu.matmul %5, %0, %cst_5 {dimension_numbers = #tpu.dot_dimension_numbers<[1], [0], [0], [1], [0, 0, 1, 1], [], []>} : vector<8x64xf32>, vector<64x64xf32>, vector<8x64xf32> -> vector<8x64xf32>
    %7 = arith.addf %6, %4 : vector<8x64xf32>
    %cst_6 = arith.constant 0.00999999977 : f32
    %8 = vector.broadcast %cst_6 : f32 to vector<8x64xf32>
    %9 = arith.mulf %8, %7 : vector<8x64xf32>
    %10 = arith.maximumf %7, %9 : vector<8x64xf32>
    %c1_i32 = arith.constant 1 : i32
    %cst_7 = arith.constant dense<0.000000e+00> : vector<8x64xf32>
    %11 = tpu.matmul %10, %0, %cst_7 {dimension_numbers = #tpu.dot_dimension_numbers<[1], [0], [0], [1], [0, 0, 1, 1], [], []>} : vector<8x64xf32>, vector<64x64xf32>, vector<8x64xf32> -> vector<8x64xf32>
    %12 = arith.addf %11, %4 : vector<8x64xf32>
    %cst_8 = arith.constant 0.00999999977 : f32
    %13 = vector.broadcast %cst_8 : f32 to vector<8x64xf32>
    %14 = arith.mulf %13, %12 : vector<8x64xf32>
    %15 = arith.maximumf %12, %14 : vector<8x64xf32>
    %c2_i32 = arith.constant 2 : i32
    %cst_9 = arith.constant dense<0.000000e+00> : vector<8x64xf32>
    %16 = tpu.matmul %15, %0, %cst_9 {dimension_numbers = #tpu.dot_dimension_numbers<[1], [0], [0], [1], [0, 0, 1, 1], [], []>} : vector<8x64xf32>, vector<64x64xf32>, vector<8x64xf32> -> vector<8x64xf32>
    %17 = arith.addf %16, %4 : vector<8x64xf32>
    %cst_10 = arith.constant 0.00999999977 : f32
    %18 = vector.broadcast %cst_10 : f32 to vector<8x64xf32>
    %19 = arith.mulf %18, %17 : vector<8x64xf32>
    %20 = arith.maximumf %17, %19 : vector<8x64xf32>
    %c3_i32 = arith.constant 3 : i32
    %cst_11 = arith.constant dense<0.000000e+00> : vector<8x64xf32>
    %21 = tpu.matmul %20, %0, %cst_11 {dimension_numbers = #tpu.dot_dimension_numbers<[1], [0], [0], [1], [0, 0, 1, 1], [], []>} : vector<8x64xf32>, vector<64x64xf32>, vector<8x64xf32> -> vector<8x64xf32>
    %22 = arith.addf %21, %4 : vector<8x64xf32>
    %cst_12 = arith.constant 0.00999999977 : f32
    %23 = vector.broadcast %cst_12 : f32 to vector<8x64xf32>
    %24 = arith.mulf %23, %22 : vector<8x64xf32>
    %25 = arith.maximumf %22, %24 : vector<8x64xf32>
    %c4_i32 = arith.constant 4 : i32
    %cst_13 = arith.constant dense<0.000000e+00> : vector<8x64xf32>
    %26 = tpu.matmul %25, %0, %cst_13 {dimension_numbers = #tpu.dot_dimension_numbers<[1], [0], [0], [1], [0, 0, 1, 1], [], []>} : vector<8x64xf32>, vector<64x64xf32>, vector<8x64xf32> -> vector<8x64xf32>
    %27 = arith.addf %26, %4 : vector<8x64xf32>
    %cst_14 = arith.constant 0.00999999977 : f32
    %28 = vector.broadcast %cst_14 : f32 to vector<8x64xf32>
    %29 = arith.mulf %28, %27 : vector<8x64xf32>
    %30 = arith.maximumf %27, %29 : vector<8x64xf32>
    %c5_i32 = arith.constant 5 : i32
    %cst_15 = arith.constant dense<0.000000e+00> : vector<8x64xf32>
    %31 = tpu.matmul %30, %0, %cst_15 {dimension_numbers = #tpu.dot_dimension_numbers<[1], [0], [0], [1], [0, 0, 1, 1], [], []>} : vector<8x64xf32>, vector<64x64xf32>, vector<8x64xf32> -> vector<8x64xf32>
    %32 = arith.addf %31, %4 : vector<8x64xf32>
    %cst_16 = arith.constant 0.00999999977 : f32
    %33 = vector.broadcast %cst_16 : f32 to vector<8x64xf32>
    %34 = arith.mulf %33, %32 : vector<8x64xf32>
    %35 = arith.maximumf %32, %34 : vector<8x64xf32>
    %c6_i32 = arith.constant 6 : i32
    %cst_17 = arith.constant dense<0.000000e+00> : vector<8x64xf32>
    %36 = tpu.matmul %35, %0, %cst_17 {dimension_numbers = #tpu.dot_dimension_numbers<[1], [0], [0], [1], [0, 0, 1, 1], [], []>} : vector<8x64xf32>, vector<64x64xf32>, vector<8x64xf32> -> vector<8x64xf32>
    %37 = arith.addf %36, %4 : vector<8x64xf32>
    %cst_18 = arith.constant 0.00999999977 : f32
    %38 = vector.broadcast %cst_18 : f32 to vector<8x64xf32>
    %39 = arith.mulf %38, %37 : vector<8x64xf32>
    %40 = arith.maximumf %37, %39 : vector<8x64xf32>
    %c7_i32 = arith.constant 7 : i32
    %cst_19 = arith.constant dense<0.000000e+00> : vector<8x64xf32>
    %41 = tpu.matmul %40, %0, %cst_19 {dimension_numbers = #tpu.dot_dimension_numbers<[1], [0], [0], [1], [0, 0, 1, 1], [], []>} : vector<8x64xf32>, vector<64x64xf32>, vector<8x64xf32> -> vector<8x64xf32>
    %42 = arith.addf %41, %4 : vector<8x64xf32>
    %cst_20 = arith.constant 0.00999999977 : f32
    %43 = vector.broadcast %cst_20 : f32 to vector<8x64xf32>
    %44 = arith.mulf %43, %42 : vector<8x64xf32>
    %45 = arith.maximumf %42, %44 : vector<8x64xf32>
    %c8_i32 = arith.constant 8 : i32
    %cst_21 = arith.constant dense<0.000000e+00> : vector<8x64xf32>
    %46 = tpu.matmul %45, %0, %cst_21 {dimension_numbers = #tpu.dot_dimension_numbers<[1], [0], [0], [1], [0, 0, 1, 1], [], []>} : vector<8x64xf32>, vector<64x64xf32>, vector<8x64xf32> -> vector<8x64xf32>
    %47 = arith.addf %46, %4 : vector<8x64xf32>
    %cst_22 = arith.constant 0.00999999977 : f32
    %48 = vector.broadcast %cst_22 : f32 to vector<8x64xf32>
    %49 = arith.mulf %48, %47 : vector<8x64xf32>
    %50 = arith.maximumf %47, %49 : vector<8x64xf32>
    %c9_i32 = arith.constant 9 : i32
    %cst_23 = arith.constant dense<0.000000e+00> : vector<8x64xf32>
    %51 = tpu.matmul %50, %0, %cst_23 {dimension_numbers = #tpu.dot_dimension_numbers<[1], [0], [0], [1], [0, 0, 1, 1], [], []>} : vector<8x64xf32>, vector<64x64xf32>, vector<8x64xf32> -> vector<8x64xf32>
    %52 = arith.addf %51, %4 : vector<8x64xf32>
    %cst_24 = arith.constant 0.00999999977 : f32
    %53 = vector.broadcast %cst_24 : f32 to vector<8x64xf32>
    %54 = arith.mulf %53, %52 : vector<8x64xf32>
    %55 = arith.maximumf %52, %54 : vector<8x64xf32>
    %c10_i32 = arith.constant 10 : i32
    %cst_25 = arith.constant dense<0.000000e+00> : vector<8x64xf32>
    %56 = tpu.matmul %55, %0, %cst_25 {dimension_numbers = #tpu.dot_dimension_numbers<[1], [0], [0], [1], [0, 0, 1, 1], [], []>} : vector<8x64xf32>, vector<64x64xf32>, vector<8x64xf32> -> vector<8x64xf32>
    %57 = arith.addf %56, %4 : vector<8x64xf32>
    %cst_26 = arith.constant 0.00999999977 : f32
    %58 = vector.broadcast %cst_26 : f32 to vector<8x64xf32>
    %59 = arith.mulf %58, %57 : vector<8x64xf32>
    %60 = arith.maximumf %57, %59 : vector<8x64xf32>
    %c11_i32 = arith.constant 11 : i32
    %cst_27 = arith.constant dense<0.000000e+00> : vector<8x64xf32>
    %61 = tpu.matmul %60, %0, %cst_27 {dimension_numbers = #tpu.dot_dimension_numbers<[1], [0], [0], [1], [0, 0, 1, 1], [], []>} : vector<8x64xf32>, vector<64x64xf32>, vector<8x64xf32> -> vector<8x64xf32>
    %62 = arith.addf %61, %4 : vector<8x64xf32>
    %cst_28 = arith.constant 0.00999999977 : f32
    %63 = vector.broadcast %cst_28 : f32 to vector<8x64xf32>
    %64 = arith.mulf %63, %62 : vector<8x64xf32>
    %65 = arith.maximumf %62, %64 : vector<8x64xf32>
    %c12_i32 = arith.constant 12 : i32
    %cst_29 = arith.constant dense<0.000000e+00> : vector<8x64xf32>
    %66 = tpu.matmul %65, %0, %cst_29 {dimension_numbers = #tpu.dot_dimension_numbers<[1], [0], [0], [1], [0, 0, 1, 1], [], []>} : vector<8x64xf32>, vector<64x64xf32>, vector<8x64xf32> -> vector<8x64xf32>
    %67 = arith.addf %66, %4 : vector<8x64xf32>
    %cst_30 = arith.constant 0.00999999977 : f32
    %68 = vector.broadcast %cst_30 : f32 to vector<8x64xf32>
    %69 = arith.mulf %68, %67 : vector<8x64xf32>
    %70 = arith.maximumf %67, %69 : vector<8x64xf32>
    %c13_i32 = arith.constant 13 : i32
    %cst_31 = arith.constant dense<0.000000e+00> : vector<8x64xf32>
    %71 = tpu.matmul %70, %0, %cst_31 {dimension_numbers = #tpu.dot_dimension_numbers<[1], [0], [0], [1], [0, 0, 1, 1], [], []>} : vector<8x64xf32>, vector<64x64xf32>, vector<8x64xf32> -> vector<8x64xf32>
    %72 = arith.addf %71, %4 : vector<8x64xf32>
    %cst_32 = arith.constant 0.00999999977 : f32
    %73 = vector.broadcast %cst_32 : f32 to vector<8x64xf32>
    %74 = arith.mulf %73, %72 : vector<8x64xf32>
    %75 = arith.maximumf %72, %74 : vector<8x64xf32>
    %c14_i32 = arith.constant 14 : i32
    %cst_33 = arith.constant dense<0.000000e+00> : vector<8x64xf32>
    %76 = tpu.matmul %75, %0, %cst_33 {dimension_numbers = #tpu.dot_dimension_numbers<[1], [0], [0], [1], [0, 0, 1, 1], [], []>} : vector<8x64xf32>, vector<64x64xf32>, vector<8x64xf32> -> vector<8x64xf32>
    %77 = arith.addf %76, %4 : vector<8x64xf32>
    %cst_34 = arith.constant 0.00999999977 : f32
    %78 = vector.broadcast %cst_34 : f32 to vector<8x64xf32>
    %79 = arith.mulf %78, %77 : vector<8x64xf32>
    %80 = arith.maximumf %77, %79 : vector<8x64xf32>
    %c15_i32 = arith.constant 15 : i32
    %cst_35 = arith.constant dense<0.000000e+00> : vector<8x64xf32>
    %81 = tpu.matmul %80, %0, %cst_35 {dimension_numbers = #tpu.dot_dimension_numbers<[1], [0], [0], [1], [0, 0, 1, 1], [], []>} : vector<8x64xf32>, vector<64x64xf32>, vector<8x64xf32> -> vector<8x64xf32>
    %82 = arith.addf %81, %4 : vector<8x64xf32>
    %cst_36 = arith.constant 0.00999999977 : f32
    %83 = vector.broadcast %cst_36 : f32 to vector<8x64xf32>
    %84 = arith.mulf %83, %82 : vector<8x64xf32>
    %85 = arith.maximumf %82, %84 : vector<8x64xf32>
    %c16_i32 = arith.constant 16 : i32
    %cst_37 = arith.constant dense<0.000000e+00> : vector<8x64xf32>
    %86 = tpu.matmul %85, %0, %cst_37 {dimension_numbers = #tpu.dot_dimension_numbers<[1], [0], [0], [1], [0, 0, 1, 1], [], []>} : vector<8x64xf32>, vector<64x64xf32>, vector<8x64xf32> -> vector<8x64xf32>
    %87 = arith.addf %86, %4 : vector<8x64xf32>
    %cst_38 = arith.constant 0.00999999977 : f32
    %88 = vector.broadcast %cst_38 : f32 to vector<8x64xf32>
    %89 = arith.mulf %88, %87 : vector<8x64xf32>
    %90 = arith.maximumf %87, %89 : vector<8x64xf32>
    %c17_i32 = arith.constant 17 : i32
    %cst_39 = arith.constant dense<0.000000e+00> : vector<8x64xf32>
    %91 = tpu.matmul %90, %0, %cst_39 {dimension_numbers = #tpu.dot_dimension_numbers<[1], [0], [0], [1], [0, 0, 1, 1], [], []>} : vector<8x64xf32>, vector<64x64xf32>, vector<8x64xf32> -> vector<8x64xf32>
    %92 = arith.addf %91, %4 : vector<8x64xf32>
    %cst_40 = arith.constant 0.00999999977 : f32
    %93 = vector.broadcast %cst_40 : f32 to vector<8x64xf32>
    %94 = arith.mulf %93, %92 : vector<8x64xf32>
    %95 = arith.maximumf %92, %94 : vector<8x64xf32>
    %c18_i32 = arith.constant 18 : i32
    %cst_41 = arith.constant dense<0.000000e+00> : vector<8x64xf32>
    %96 = tpu.matmul %95, %0, %cst_41 {dimension_numbers = #tpu.dot_dimension_numbers<[1], [0], [0], [1], [0, 0, 1, 1], [], []>} : vector<8x64xf32>, vector<64x64xf32>, vector<8x64xf32> -> vector<8x64xf32>
    %97 = arith.addf %96, %4 : vector<8x64xf32>
    %cst_42 = arith.constant 0.00999999977 : f32
    %98 = vector.broadcast %cst_42 : f32 to vector<8x64xf32>
    %99 = arith.mulf %98, %97 : vector<8x64xf32>
    %100 = arith.maximumf %97, %99 : vector<8x64xf32>
    %c19_i32 = arith.constant 19 : i32
    %cst_43 = arith.constant dense<0.000000e+00> : vector<8x64xf32>
    %101 = tpu.matmul %100, %0, %cst_43 {dimension_numbers = #tpu.dot_dimension_numbers<[1], [0], [0], [1], [0, 0, 1, 1], [], []>} : vector<8x64xf32>, vector<64x64xf32>, vector<8x64xf32> -> vector<8x64xf32>
    %102 = arith.addf %101, %4 : vector<8x64xf32>
    %cst_44 = arith.constant 0.00999999977 : f32
    %103 = vector.broadcast %cst_44 : f32 to vector<8x64xf32>
    %104 = arith.mulf %103, %102 : vector<8x64xf32>
    %105 = arith.maximumf %102, %104 : vector<8x64xf32>
    %c20_i32 = arith.constant 20 : i32
    %cst_45 = arith.constant dense<0.000000e+00> : vector<8x64xf32>
    %106 = tpu.matmul %105, %0, %cst_45 {dimension_numbers = #tpu.dot_dimension_numbers<[1], [0], [0], [1], [0, 0, 1, 1], [], []>} : vector<8x64xf32>, vector<64x64xf32>, vector<8x64xf32> -> vector<8x64xf32>
    %107 = arith.addf %106, %4 : vector<8x64xf32>
    %cst_46 = arith.constant 0.00999999977 : f32
    %108 = vector.broadcast %cst_46 : f32 to vector<8x64xf32>
    %109 = arith.mulf %108, %107 : vector<8x64xf32>
    %110 = arith.maximumf %107, %109 : vector<8x64xf32>
    %c21_i32 = arith.constant 21 : i32
    %cst_47 = arith.constant dense<0.000000e+00> : vector<8x64xf32>
    %111 = tpu.matmul %110, %0, %cst_47 {dimension_numbers = #tpu.dot_dimension_numbers<[1], [0], [0], [1], [0, 0, 1, 1], [], []>} : vector<8x64xf32>, vector<64x64xf32>, vector<8x64xf32> -> vector<8x64xf32>
    %112 = arith.addf %111, %4 : vector<8x64xf32>
    %cst_48 = arith.constant 0.00999999977 : f32
    %113 = vector.broadcast %cst_48 : f32 to vector<8x64xf32>
    %114 = arith.mulf %113, %112 : vector<8x64xf32>
    %115 = arith.maximumf %112, %114 : vector<8x64xf32>
    %c22_i32 = arith.constant 22 : i32
    %cst_49 = arith.constant dense<0.000000e+00> : vector<8x64xf32>
    %116 = tpu.matmul %115, %0, %cst_49 {dimension_numbers = #tpu.dot_dimension_numbers<[1], [0], [0], [1], [0, 0, 1, 1], [], []>} : vector<8x64xf32>, vector<64x64xf32>, vector<8x64xf32> -> vector<8x64xf32>
    %117 = arith.addf %116, %4 : vector<8x64xf32>
    %cst_50 = arith.constant 0.00999999977 : f32
    %118 = vector.broadcast %cst_50 : f32 to vector<8x64xf32>
    %119 = arith.mulf %118, %117 : vector<8x64xf32>
    %120 = arith.maximumf %117, %119 : vector<8x64xf32>
    %c23_i32 = arith.constant 23 : i32
    %cst_51 = arith.constant dense<0.000000e+00> : vector<8x64xf32>
    %121 = tpu.matmul %120, %0, %cst_51 {dimension_numbers = #tpu.dot_dimension_numbers<[1], [0], [0], [1], [0, 0, 1, 1], [], []>} : vector<8x64xf32>, vector<64x64xf32>, vector<8x64xf32> -> vector<8x64xf32>
    %122 = arith.addf %121, %4 : vector<8x64xf32>
    %cst_52 = arith.constant 0.00999999977 : f32
    %123 = vector.broadcast %cst_52 : f32 to vector<8x64xf32>
    %124 = arith.mulf %123, %122 : vector<8x64xf32>
    %125 = arith.maximumf %122, %124 : vector<8x64xf32>
    %c24_i32 = arith.constant 24 : i32
    %cst_53 = arith.constant dense<0.000000e+00> : vector<8x64xf32>
    %126 = tpu.matmul %125, %0, %cst_53 {dimension_numbers = #tpu.dot_dimension_numbers<[1], [0], [0], [1], [0, 0, 1, 1], [], []>} : vector<8x64xf32>, vector<64x64xf32>, vector<8x64xf32> -> vector<8x64xf32>
    %127 = arith.addf %126, %4 : vector<8x64xf32>
    %cst_54 = arith.constant 0.00999999977 : f32
    %128 = vector.broadcast %cst_54 : f32 to vector<8x64xf32>
    %129 = arith.mulf %128, %127 : vector<8x64xf32>
    %130 = arith.maximumf %127, %129 : vector<8x64xf32>
    %c25_i32 = arith.constant 25 : i32
    %cst_55 = arith.constant dense<0.000000e+00> : vector<8x64xf32>
    %131 = tpu.matmul %130, %0, %cst_55 {dimension_numbers = #tpu.dot_dimension_numbers<[1], [0], [0], [1], [0, 0, 1, 1], [], []>} : vector<8x64xf32>, vector<64x64xf32>, vector<8x64xf32> -> vector<8x64xf32>
    %132 = arith.addf %131, %4 : vector<8x64xf32>
    %cst_56 = arith.constant 0.00999999977 : f32
    %133 = vector.broadcast %cst_56 : f32 to vector<8x64xf32>
    %134 = arith.mulf %133, %132 : vector<8x64xf32>
    %135 = arith.maximumf %132, %134 : vector<8x64xf32>
    %c26_i32 = arith.constant 26 : i32
    %cst_57 = arith.constant dense<0.000000e+00> : vector<8x64xf32>
    %136 = tpu.matmul %135, %0, %cst_57 {dimension_numbers = #tpu.dot_dimension_numbers<[1], [0], [0], [1], [0, 0, 1, 1], [], []>} : vector<8x64xf32>, vector<64x64xf32>, vector<8x64xf32> -> vector<8x64xf32>
    %137 = arith.addf %136, %4 : vector<8x64xf32>
    %cst_58 = arith.constant 0.00999999977 : f32
    %138 = vector.broadcast %cst_58 : f32 to vector<8x64xf32>
    %139 = arith.mulf %138, %137 : vector<8x64xf32>
    %140 = arith.maximumf %137, %139 : vector<8x64xf32>
    %c27_i32 = arith.constant 27 : i32
    %cst_59 = arith.constant dense<0.000000e+00> : vector<8x64xf32>
    %141 = tpu.matmul %140, %0, %cst_59 {dimension_numbers = #tpu.dot_dimension_numbers<[1], [0], [0], [1], [0, 0, 1, 1], [], []>} : vector<8x64xf32>, vector<64x64xf32>, vector<8x64xf32> -> vector<8x64xf32>
    %142 = arith.addf %141, %4 : vector<8x64xf32>
    %cst_60 = arith.constant 0.00999999977 : f32
    %143 = vector.broadcast %cst_60 : f32 to vector<8x64xf32>
    %144 = arith.mulf %143, %142 : vector<8x64xf32>
    %145 = arith.maximumf %142, %144 : vector<8x64xf32>
    %c28_i32 = arith.constant 28 : i32
    %cst_61 = arith.constant dense<0.000000e+00> : vector<8x64xf32>
    %146 = tpu.matmul %145, %0, %cst_61 {dimension_numbers = #tpu.dot_dimension_numbers<[1], [0], [0], [1], [0, 0, 1, 1], [], []>} : vector<8x64xf32>, vector<64x64xf32>, vector<8x64xf32> -> vector<8x64xf32>
    %147 = arith.addf %146, %4 : vector<8x64xf32>
    %cst_62 = arith.constant 0.00999999977 : f32
    %148 = vector.broadcast %cst_62 : f32 to vector<8x64xf32>
    %149 = arith.mulf %148, %147 : vector<8x64xf32>
    %150 = arith.maximumf %147, %149 : vector<8x64xf32>
    %c29_i32 = arith.constant 29 : i32
    %cst_63 = arith.constant dense<0.000000e+00> : vector<8x64xf32>
    %151 = tpu.matmul %150, %0, %cst_63 {dimension_numbers = #tpu.dot_dimension_numbers<[1], [0], [0], [1], [0, 0, 1, 1], [], []>} : vector<8x64xf32>, vector<64x64xf32>, vector<8x64xf32> -> vector<8x64xf32>
    %152 = arith.addf %151, %4 : vector<8x64xf32>
    %cst_64 = arith.constant 0.00999999977 : f32
    %153 = vector.broadcast %cst_64 : f32 to vector<8x64xf32>
    %154 = arith.mulf %153, %152 : vector<8x64xf32>
    %155 = arith.maximumf %152, %154 : vector<8x64xf32>
    %c30_i32 = arith.constant 30 : i32
    %cst_65 = arith.constant dense<0.000000e+00> : vector<8x64xf32>
    %156 = tpu.matmul %155, %0, %cst_65 {dimension_numbers = #tpu.dot_dimension_numbers<[1], [0], [0], [1], [0, 0, 1, 1], [], []>} : vector<8x64xf32>, vector<64x64xf32>, vector<8x64xf32> -> vector<8x64xf32>
    %157 = arith.addf %156, %4 : vector<8x64xf32>
    %cst_66 = arith.constant 0.00999999977 : f32
    %158 = vector.broadcast %cst_66 : f32 to vector<8x64xf32>
    %159 = arith.mulf %158, %157 : vector<8x64xf32>
    %160 = arith.maximumf %157, %159 : vector<8x64xf32>
    %c31_i32 = arith.constant 31 : i32
    %cst_67 = arith.constant dense<0.000000e+00> : vector<8x64xf32>
    %161 = tpu.matmul %160, %0, %cst_67 {dimension_numbers = #tpu.dot_dimension_numbers<[1], [0], [0], [1], [0, 0, 1, 1], [], []>} : vector<8x64xf32>, vector<64x64xf32>, vector<8x64xf32> -> vector<8x64xf32>
    %162 = arith.addf %161, %4 : vector<8x64xf32>
    %cst_68 = arith.constant 0.00999999977 : f32
    %163 = vector.broadcast %cst_68 : f32 to vector<8x64xf32>
    %164 = arith.mulf %163, %162 : vector<8x64xf32>
    %165 = arith.maximumf %162, %164 : vector<8x64xf32>
    %c32_i32 = arith.constant 32 : i32
    %cst_69 = arith.constant dense<0.000000e+00> : vector<8x64xf32>
    %166 = tpu.matmul %165, %0, %cst_69 {dimension_numbers = #tpu.dot_dimension_numbers<[1], [0], [0], [1], [0, 0, 1, 1], [], []>} : vector<8x64xf32>, vector<64x64xf32>, vector<8x64xf32> -> vector<8x64xf32>
    %167 = arith.addf %166, %4 : vector<8x64xf32>
    %cst_70 = arith.constant 0.00999999977 : f32
    %168 = vector.broadcast %cst_70 : f32 to vector<8x64xf32>
    %169 = arith.mulf %168, %167 : vector<8x64xf32>
    %170 = arith.maximumf %167, %169 : vector<8x64xf32>
    %c33_i32 = arith.constant 33 : i32
    %cst_71 = arith.constant dense<0.000000e+00> : vector<8x64xf32>
    %171 = tpu.matmul %170, %0, %cst_71 {dimension_numbers = #tpu.dot_dimension_numbers<[1], [0], [0], [1], [0, 0, 1, 1], [], []>} : vector<8x64xf32>, vector<64x64xf32>, vector<8x64xf32> -> vector<8x64xf32>
    %172 = arith.addf %171, %4 : vector<8x64xf32>
    %cst_72 = arith.constant 0.00999999977 : f32
    %173 = vector.broadcast %cst_72 : f32 to vector<8x64xf32>
    %174 = arith.mulf %173, %172 : vector<8x64xf32>
    %175 = arith.maximumf %172, %174 : vector<8x64xf32>
    %c34_i32 = arith.constant 34 : i32
    %cst_73 = arith.constant dense<0.000000e+00> : vector<8x64xf32>
    %176 = tpu.matmul %175, %0, %cst_73 {dimension_numbers = #tpu.dot_dimension_numbers<[1], [0], [0], [1], [0, 0, 1, 1], [], []>} : vector<8x64xf32>, vector<64x64xf32>, vector<8x64xf32> -> vector<8x64xf32>
    %177 = arith.addf %176, %4 : vector<8x64xf32>
    %cst_74 = arith.constant 0.00999999977 : f32
    %178 = vector.broadcast %cst_74 : f32 to vector<8x64xf32>
    %179 = arith.mulf %178, %177 : vector<8x64xf32>
    %180 = arith.maximumf %177, %179 : vector<8x64xf32>
    %c35_i32 = arith.constant 35 : i32
    %cst_75 = arith.constant dense<0.000000e+00> : vector<8x64xf32>
    %181 = tpu.matmul %180, %0, %cst_75 {dimension_numbers = #tpu.dot_dimension_numbers<[1], [0], [0], [1], [0, 0, 1, 1], [], []>} : vector<8x64xf32>, vector<64x64xf32>, vector<8x64xf32> -> vector<8x64xf32>
    %182 = arith.addf %181, %4 : vector<8x64xf32>
    %cst_76 = arith.constant 0.00999999977 : f32
    %183 = vector.broadcast %cst_76 : f32 to vector<8x64xf32>
    %184 = arith.mulf %183, %182 : vector<8x64xf32>
    %185 = arith.maximumf %182, %184 : vector<8x64xf32>
    %c36_i32 = arith.constant 36 : i32
    %cst_77 = arith.constant dense<0.000000e+00> : vector<8x64xf32>
    %186 = tpu.matmul %185, %0, %cst_77 {dimension_numbers = #tpu.dot_dimension_numbers<[1], [0], [0], [1], [0, 0, 1, 1], [], []>} : vector<8x64xf32>, vector<64x64xf32>, vector<8x64xf32> -> vector<8x64xf32>
    %187 = arith.addf %186, %4 : vector<8x64xf32>
    %cst_78 = arith.constant 0.00999999977 : f32
    %188 = vector.broadcast %cst_78 : f32 to vector<8x64xf32>
    %189 = arith.mulf %188, %187 : vector<8x64xf32>
    %190 = arith.maximumf %187, %189 : vector<8x64xf32>
    %c37_i32 = arith.constant 37 : i32
    %cst_79 = arith.constant dense<0.000000e+00> : vector<8x64xf32>
    %191 = tpu.matmul %190, %0, %cst_79 {dimension_numbers = #tpu.dot_dimension_numbers<[1], [0], [0], [1], [0, 0, 1, 1], [], []>} : vector<8x64xf32>, vector<64x64xf32>, vector<8x64xf32> -> vector<8x64xf32>
    %192 = arith.addf %191, %4 : vector<8x64xf32>
    %cst_80 = arith.constant 0.00999999977 : f32
    %193 = vector.broadcast %cst_80 : f32 to vector<8x64xf32>
    %194 = arith.mulf %193, %192 : vector<8x64xf32>
    %195 = arith.maximumf %192, %194 : vector<8x64xf32>
    %c38_i32 = arith.constant 38 : i32
    %cst_81 = arith.constant dense<0.000000e+00> : vector<8x64xf32>
    %196 = tpu.matmul %195, %0, %cst_81 {dimension_numbers = #tpu.dot_dimension_numbers<[1], [0], [0], [1], [0, 0, 1, 1], [], []>} : vector<8x64xf32>, vector<64x64xf32>, vector<8x64xf32> -> vector<8x64xf32>
    %197 = arith.addf %196, %4 : vector<8x64xf32>
    %cst_82 = arith.constant 0.00999999977 : f32
    %198 = vector.broadcast %cst_82 : f32 to vector<8x64xf32>
    %199 = arith.mulf %198, %197 : vector<8x64xf32>
    %200 = arith.maximumf %197, %199 : vector<8x64xf32>
    %c39_i32 = arith.constant 39 : i32
    %cst_83 = arith.constant dense<0.000000e+00> : vector<8x64xf32>
    %201 = tpu.matmul %200, %0, %cst_83 {dimension_numbers = #tpu.dot_dimension_numbers<[1], [0], [0], [1], [0, 0, 1, 1], [], []>} : vector<8x64xf32>, vector<64x64xf32>, vector<8x64xf32> -> vector<8x64xf32>
    %202 = arith.addf %201, %4 : vector<8x64xf32>
    %cst_84 = arith.constant 0.00999999977 : f32
    %203 = vector.broadcast %cst_84 : f32 to vector<8x64xf32>
    %204 = arith.mulf %203, %202 : vector<8x64xf32>
    %205 = arith.maximumf %202, %204 : vector<8x64xf32>
    %c40_i32 = arith.constant 40 : i32
    %cst_85 = arith.constant dense<0.000000e+00> : vector<8x64xf32>
    %206 = tpu.matmul %205, %0, %cst_85 {dimension_numbers = #tpu.dot_dimension_numbers<[1], [0], [0], [1], [0, 0, 1, 1], [], []>} : vector<8x64xf32>, vector<64x64xf32>, vector<8x64xf32> -> vector<8x64xf32>
    %207 = arith.addf %206, %4 : vector<8x64xf32>
    %cst_86 = arith.constant 0.00999999977 : f32
    %208 = vector.broadcast %cst_86 : f32 to vector<8x64xf32>
    %209 = arith.mulf %208, %207 : vector<8x64xf32>
    %210 = arith.maximumf %207, %209 : vector<8x64xf32>
    %cst_87 = arith.constant dense<0.000000e+00> : vector<8x64xf32>
    %211 = tpu.matmul %210, %0, %cst_87 {dimension_numbers = #tpu.dot_dimension_numbers<[1], [0], [0], [1], [0, 0, 1, 1], [], []>} : vector<8x64xf32>, vector<64x64xf32>, vector<8x64xf32> -> vector<8x64xf32>
    %212 = arith.addf %211, %4 : vector<8x64xf32>
    %cst_88 = arith.constant 0.00999999977 : f32
    %213 = vector.broadcast %cst_88 : f32 to vector<8x64xf32>
    %214 = arith.mulf %213, %212 : vector<8x64xf32>
    %215 = arith.maximumf %212, %214 : vector<8x64xf32>
    %c42_i32 = arith.constant 42 : i32
    %216:3 = scf.while (%arg4 = %c42_i32, %arg5 = %215, %arg6 = %210) : (i32, vector<8x64xf32>, vector<8x64xf32>) -> (i32, vector<8x64xf32>, vector<8x64xf32>) {
      %218 = arith.subf %arg5, %arg6 : vector<8x64xf32>
      %219 = math.absf %218 : vector<8x64xf32>
      %220 = vector.shape_cast %219 : vector<8x64xf32> to vector<1x8x64xf32>
      %cst_91 = arith.constant dense<0.000000e+00> : vector<1xf32>
      %221 = vector.multi_reduction <add>, %220, %cst_91 [1, 2] : vector<1x8x64xf32> to vector<1xf32>
      %222 = vector.shape_cast %221 : vector<1xf32> to vector<1x1x1xf32>
      %223 = vector.extract %222[0, 0, 0] : f32 from vector<1x1x1xf32>
      %c60_i32 = arith.constant 60 : i32
      %224 = arith.cmpi slt, %arg4, %c60_i32 : i32
      %cst_92 = arith.constant 9.99999997E-7 : f32
      %225 = arith.cmpf oge, %223, %cst_92 : f32
      %226 = arith.andi %224, %225 : i1
      scf.condition(%226) %arg4, %arg5, %arg6 : i32, vector<8x64xf32>, vector<8x64xf32>
    } do {
    ^bb0(%arg4: i32, %arg5: vector<8x64xf32>, %arg6: vector<8x64xf32>):
      %c1_i32_91 = arith.constant 1 : i32
      %218 = arith.addi %arg4, %c1_i32_91 : i32
      %cst_92 = arith.constant dense<0.000000e+00> : vector<8x64xf32>
      %219 = tpu.matmul %arg5, %0, %cst_92 {dimension_numbers = #tpu.dot_dimension_numbers<[1], [0], [0], [1], [0, 0, 1, 1], [], []>} : vector<8x64xf32>, vector<64x64xf32>, vector<8x64xf32> -> vector<8x64xf32>
      %220 = arith.addf %219, %4 : vector<8x64xf32>
      %cst_93 = arith.constant 0.00999999977 : f32
      %221 = vector.broadcast %cst_93 : f32 to vector<8x64xf32>
      %222 = arith.mulf %221, %220 : vector<8x64xf32>
      %223 = arith.maximumf %220, %222 : vector<8x64xf32>
      scf.yield %218, %223, %arg5 : i32, vector<8x64xf32>, vector<8x64xf32>
    }
    %c0_89 = arith.constant 0 : index
    %c0_90 = arith.constant 0 : index
    %217 = vector.load %arg3[%c0_89, %c0_90] : memref<8x64xf32, #tpu.memory_space<vmem>>, vector<8x64xf32>
    tpu.vector_store %arg3[%c0_89, %c0_90], %216#1 {strides = array<i32>} : memref<8x64xf32, #tpu.memory_space<vmem>>, vector<8x64xf32>,
    return
  }
}

</mosaic_0001>

<bundles_post_ra>
// kernel: tpu_custom_call.1
= control target key start
LH: loop header
LB: loop body
LE: loop exit
PB: predicated region body
PF: predicated region fallthrough
CT: control target
= control target key end

     0   :  { %8 = vsyncpa [#allocation3], 0  ;;  %s1915_s0 = inlined_call_operand.hbm [shape: f32[8,64], index: 0, kind: input, shape index: {}]   ;;  %s1916_s1 = inlined_call_operand.hbm [shape: f32[1,64], index: 1, kind: input, shape index: {}]   ;;  %s1917_s2 = inlined_call_operand.hbm [shape: f32[64,64], index: 2, kind: input, shape index: {}]   ;;  %s1918_s3 = inlined_call_operand.hbm [shape: f32[8,64], index: 3, kind: output, shape index: {}]  }
   0x1   :  { %9 = vsyncpa [#allocation6], 0  ;;  %s27_s14 = sshll.u32 %s1916_s1, 4  ;;  %s28_s14 = int_to_ptr.hbm [resolvable:$true] %s27_s14 }
   0x2   :  { %10 = vsyncpa [#allocation4], 0  ;;  %s1418_s15 = smov [#allocation5]   ;;  %s16_s19 = sshll.u32 %s1915_s0, 4  ;;  %s17_s19 = int_to_ptr.hbm [resolvable:$true] %s16_s19 }
   0x3   :  { %s29_s16 = sshll.u32 %s1418_s15, 4  ;;  %s1419_s20 = smov [#allocation2]   ;;  %s30_s16 = int_to_ptr.vmem [resolvable:$true] %s29_s16 }
   0x4   :  { %32 = dma.hbm_to_vmem [thread:$0]  %s28_s14, 16, %s30_s16, [#allocation6]  }
   0x5   :  { %s18_s21 = sshll.u32 %s1419_s20, 4  ;;  %s37_s24 = sshll.u32 %s1917_s2, 4  ;;  %s19_s21 = int_to_ptr.vmem [resolvable:$true] %s18_s21  ;;  %s38_s24 = int_to_ptr.hbm [resolvable:$true] %s37_s24 }
   0x6   :  { %21 = dma.hbm_to_vmem [thread:$0]  %s17_s19, 128, %s19_s21, [#allocation3]  }
   0x7   :  { %s1420_s1 = smov [#allocation7]   ;;  %s1421_s26 = smov 128  }
   0x8   :  { %s39_s25 = sshll.u32 %s1420_s1, 4  ;;  %s1422_s27 = smov 8   ;;  %s40_s25 = int_to_ptr.vmem [resolvable:$true] %s39_s25 }
   0x9   :  { %45 = dma.hbm_to_vmem [thread:$0]  %s38_s24, 1024, %s40_s25, [#allocation6], %s1421_s26, %s1421_s26, %s1422_s27  }
   0xa   :  { %1400 = dma.done.wait [#allocation3], 128  }
   0xb   :  { %1401 = vsyncadd [#allocation3], 4294967168 }
   0xc   :  { %1402 = dma.done.wait [#allocation6], 1040  }
   0xd   :  { %1403 = vsyncadd [#allocation6], 4294966256  ;;  %v1454_v0 = vld [vmem:[#allocation7 + $0x30] sm:$0xff]  ;;  %v1456_v1 = vld [vmem:[#allocation7 + $0x38] sm:$0xff]  ;;  %v1423_v8 = vmov 0.0   ;;  %vm72_vm0 = vcmask 523264  }
   0xe   :  { %84 = vmatpush.msra.mxu0 %v1456_v1  ;;  %109 = vmatpush.msra.mxu1 %v1456_v1  ;;  %v1460_v2 = vld [vmem:[#allocation7 + $0x28] sm:$0xff]  ;;  %v1466_v3 = vld [vmem:[#allocation7 + $0x20] sm:$0xff]  ;;  %v1472_v4 = vld [vmem:[#allocation7 + $0x18] sm:$0xff] }
   0xf   :  { %134 = vmatpush.msra.mxu2 %v1456_v1  ;;  %159 = vmatpush.msra.mxu3 %v1456_v1  ;;  %v1478_v5 = vld [vmem:[#allocation7 + $0x10] sm:$0xff]  ;;  %v1484_v6 = vld [vmem:[#allocation7 + $0x8] sm:$0xff]  ;;  %v1490_v7 = vld [vmem:[#allocation7] sm:$0xff] }
  0x10   :  { %85 = vmatpush.msra.mxu0 %v1454_v0  ;;  %110 = vmatpush.msra.mxu1 %v1454_v0  ;;  %v1291_v9 = vld [vmem:[#allocation5] ss:$0 sm:$0xff]  ;;  %v66_v10 = vld [vmem:[#allocation2] sm:$0xff] }
  0x11   :  { %135 = vmatpush.msra.mxu2 %v1454_v0  ;;  %160 = vmatpush.msra.mxu3 %v1454_v0  ;;  %v1542_v11 = vadd.f32 %v1291_v9, %v66_v10 }
  0x12   :  { %86 = vmatpush.msra.mxu0 %v1460_v2  ;;  %111 = vmatpush.msra.mxu1 %v1460_v2 }
  0x13   :  { %136 = vmatpush.msra.mxu2 %v1460_v2  ;;  %161 = vmatpush.msra.mxu3 %v1460_v2 }
  0x14   :  { %87 = vmatpush.msra.mxu0 %v1466_v3  ;;  %112 = vmatpush.msra.mxu1 %v1466_v3 }
  0x15   :  { %137 = vmatpush.msra.mxu2 %v1466_v3  ;;  %162 = vmatpush.msra.mxu3 %v1466_v3 }
  0x16   :  { %88 = vmatpush.msra.mxu0 %v1472_v4  ;;  %113 = vmatpush.msra.mxu1 %v1472_v4 }
  0x17   :  { %138 = vmatpush.msra.mxu2 %v1472_v4  ;;  %163 = vmatpush.msra.mxu3 %v1472_v4 }
  0x18   :  { %89 = vmatpush.msra.mxu0 %v1478_v5  ;;  %114 = vmatpush.msra.mxu1 %v1478_v5 }
  0x19   :  { %139 = vmatpush.msra.mxu2 %v1478_v5  ;;  %164 = vmatpush.msra.mxu3 %v1478_v5 }
  0x1a   :  { %90 = vmatpush.msra.mxu0 %v1484_v6  ;;  %115 = vmatpush.msra.mxu1 %v1484_v6 }
  0x1b   :  { %140 = vmatpush.msra.mxu2 %v1484_v6  ;;  %165 = vmatpush.msra.mxu3 %v1484_v6 }
  0x1c   :  { %91 = vmatpush.msra.mxu0 %v1490_v7  ;;  %116 = vmatpush.msra.mxu1 %v1490_v7 }
  0x1d   :  { %92 = vmatmul.f32.vlgmr.msra.gmra.mxu0 %v1423_v8  ;;  %141 = vmatpush.msra.mxu2 %v1490_v7 }
  0x1e   :  { %166 = vmatpush.msra.mxu3 %v1490_v7  ;;  %184 = vmatpush.msrb.mxu0 %v1456_v1 }
  0x1f   :  { %209 = vmatpush.msrb.mxu1 %v1456_v1  ;;  %234 = vmatpush.msrb.mxu2 %v1456_v1 }
  0x20   :  { %185 = vmatpush.msrb.mxu0 %v1454_v0  ;;  %259 = vmatpush.msrb.mxu3 %v1456_v1 }
  0x21   :  { %210 = vmatpush.msrb.mxu1 %v1454_v0  ;;  %235 = vmatpush.msrb.mxu2 %v1454_v0 }
  0x22   :  { %186 = vmatpush.msrb.mxu0 %v1460_v2  ;;  %260 = vmatpush.msrb.mxu3 %v1454_v0 }
  0x23   :  { %211 = vmatpush.msrb.mxu1 %v1460_v2  ;;  %236 = vmatpush.msrb.mxu2 %v1460_v2 }
  0x24   :  { %187 = vmatpush.msrb.mxu0 %v1466_v3  ;;  %261 = vmatpush.msrb.mxu3 %v1460_v2 }
  0x25   :  { %212 = vmatpush.msrb.mxu1 %v1466_v3  ;;  %237 = vmatpush.msrb.mxu2 %v1466_v3 }
  0x26   :  { %188 = vmatpush.msrb.mxu0 %v1472_v4  ;;  %262 = vmatpush.msrb.mxu3 %v1466_v3 }
  0x27   :  { %213 = vmatpush.msrb.mxu1 %v1472_v4  ;;  %238 = vmatpush.msrb.mxu2 %v1472_v4 }
  0x28   :  { %189 = vmatpush.msrb.mxu0 %v1478_v5  ;;  %263 = vmatpush.msrb.mxu3 %v1472_v4 }
  0x29   :  { %214 = vmatpush.msrb.mxu1 %v1478_v5  ;;  %239 = vmatpush.msrb.mxu2 %v1478_v5 }
  0x2a   :  { %190 = vmatpush.msrb.mxu0 %v1484_v6  ;;  %264 = vmatpush.msrb.mxu3 %v1478_v5 }
  0x2b   :  { %215 = vmatpush.msrb.mxu1 %v1484_v6  ;;  %240 = vmatpush.msrb.mxu2 %v1484_v6 }
  0x2c   :  { %191 = vmatpush.msrb.mxu0 %v1490_v7  ;;  %265 = vmatpush.msrb.mxu3 %v1484_v6 }
  0x2d   :  { %216 = vmatpush.msrb.mxu1 %v1490_v7  ;;  %241 = vmatpush.msrb.mxu2 %v1490_v7 }
  0x2e   :  { %266 = vmatpush.msrb.mxu3 %v1490_v7  ;;  %284 = vmatpush.msra.mxu0 %v1456_v1 }
  0x30   :  { %285 = vmatpush.msra.mxu0 %v1454_v0 }
  0x32   :  { %286 = vmatpush.msra.mxu0 %v1460_v2 }
  0x34   :  { %287 = vmatpush.msra.mxu0 %v1466_v3 }
  0x36   :  { %288 = vmatpush.msra.mxu0 %v1472_v4 }
  0x38   :  { %289 = vmatpush.msra.mxu0 %v1478_v5 }
  0x3a   :  { %290 = vmatpush.msra.mxu0 %v1484_v6 }
  0x3c   :  { %291 = vmatpush.msra.mxu0 %v1490_v7 }
  0x9a   :  { %v93_v12 = vpop.f32.mrf.mxu0 }
  0x9b   :  { %v94_v13 = vadd.f32 %v93_v12, %v1542_v11 }
  0x9d   :  { %v96_v14 = vmul.f32 0.01, %v94_v13 }
  0x9f   :  { %v97_v15 = vmax.f32 %v94_v13, %v96_v14 }
  0xa1   :  { %1213 = vmatmul.msk.f32.vlgmr.msra.gmra.mxu1 %vm72_vm0, %v97_v15 }
  0xa2   :  { %309 = vmatpush.msra.mxu1 %v1456_v1 }
  0xa4   :  { %310 = vmatpush.msra.mxu1 %v1454_v0 }
  0xa6   :  { %311 = vmatpush.msra.mxu1 %v1460_v2 }
  0xa8   :  { %312 = vmatpush.msra.mxu1 %v1466_v3 }
  0xaa   :  { %313 = vmatpush.msra.mxu1 %v1472_v4 }
  0xac   :  { %314 = vmatpush.msra.mxu1 %v1478_v5 }
  0xae   :  { %315 = vmatpush.msra.mxu1 %v1484_v6 }
  0xb0   :  { %316 = vmatpush.msra.mxu1 %v1490_v7 }
 0x11e   :  { %v118_v16 = vpop.f32.mrf.mxu1 }
 0x11f   :  { %v119_v17 = vadd.f32 %v118_v16, %v1542_v11 }
 0x121   :  { %v121_v18 = vmul.f32 0.01, %v119_v17 }
 0x123   :  { %v122_v19 = vmax.f32 %v119_v17, %v121_v18 }
 0x125   :  { %1214 = vmatmul.msk.f32.vlgmr.msra.gmra.mxu2 %vm72_vm0, %v122_v19 }
 0x126   :  { %334 = vmatpush.msra.mxu2 %v1456_v1 }
 0x128   :  { %335 = vmatpush.msra.mxu2 %v1454_v0 }
 0x12a   :  { %336 = vmatpush.msra.mxu2 %v1460_v2 }
 0x12c   :  { %337 = vmatpush.msra.mxu2 %v1466_v3 }
 0x12e   :  { %338 = vmatpush.msra.mxu2 %v1472_v4 }
 0x130   :  { %339 = vmatpush.msra.mxu2 %v1478_v5 }
 0x132   :  { %340 = vmatpush.msra.mxu2 %v1484_v6 }
 0x134   :  { %341 = vmatpush.msra.mxu2 %v1490_v7 }
 0x1a8   :  { %v143_v20 = vpop.f32.mrf.mxu2 }
 0x1a9   :  { %v144_v21 = vadd.f32 %v143_v20, %v1542_v11 }
 0x1ab   :  { %v146_v22 = vmul.f32 0.01, %v144_v21 }
 0x1ad   :  { %v147_v23 = vmax.f32 %v144_v21, %v146_v22 }
 0x1af   :  { %1215 = vmatmul.msk.f32.vlgmr.msra.gmra.mxu3 %vm72_vm0, %v147_v23 }
 0x1b0   :  { %359 = vmatpush.msra.mxu3 %v1456_v1 }
 0x1b2   :  { %360 = vmatpush.msra.mxu3 %v1454_v0 }
 0x1b4   :  { %361 = vmatpush.msra.mxu3 %v1460_v2 }
 0x1b6   :  { %362 = vmatpush.msra.mxu3 %v1466_v3 }
 0x1b8   :  { %363 = vmatpush.msra.mxu3 %v1472_v4 }
 0x1ba   :  { %364 = vmatpush.msra.mxu3 %v1478_v5 }
 0x1bc   :  { %365 = vmatpush.msra.mxu3 %v1484_v6 }
 0x1be   :  { %366 = vmatpush.msra.mxu3 %v1490_v7 }
 0x232   :  { %v168_v24 = vpop.f32.mrf.mxu3 }
 0x233   :  { %v169_v25 = vadd.f32 %v168_v24, %v1542_v11 }
 0x235   :  { %v171_v26 = vmul.f32 0.01, %v169_v25 }
 0x237   :  { %v172_v27 = vmax.f32 %v169_v25, %v171_v26 }
 0x239   :  { %1216 = vmatmul.msk.f32.vlgmr.msrb.gmra.mxu0 %vm72_vm0, %v172_v27 }
 0x23a   :  { %384 = vmatpush.msrb.mxu0 %v1456_v1 }
 0x23c   :  { %385 = vmatpush.msrb.mxu0 %v1454_v0 }
 0x23e   :  { %386 = vmatpush.msrb.mxu0 %v1460_v2 }
 0x240   :  { %387 = vmatpush.msrb.mxu0 %v1466_v3 }
 0x242   :  { %388 = vmatpush.msrb.mxu0 %v1472_v4 }
 0x244   :  { %389 = vmatpush.msrb.mxu0 %v1478_v5 }
 0x246   :  { %390 = vmatpush.msrb.mxu0 %v1484_v6 }
 0x248   :  { %391 = vmatpush.msrb.mxu0 %v1490_v7 }
 0x2b6   :  { %v193_v28 = vpop.f32.mrf.mxu0 }
 0x2b7   :  { %v194_v29 = vadd.f32 %v193_v28, %v1542_v11 }
 0x2b9   :  { %v196_v30 = vmul.f32 0.01, %v194_v29 }
 0x2bb   :  { %v197_v31 = vmax.f32 %v194_v29, %v196_v30 }
 0x2bd   :  { %1217 = vmatmul.msk.f32.vlgmr.msrb.gmra.mxu1 %vm72_vm0, %v197_v31 }
 0x2be   :  { %409 = vmatpush.msrb.mxu1 %v1456_v1 }
 0x2c0   :  { %410 = vmatpush.msrb.mxu1 %v1454_v0 }
 0x2c2   :  { %411 = vmatpush.msrb.mxu1 %v1460_v2 }
 0x2c4   :  { %412 = vmatpush.msrb.mxu1 %v1466_v3 }
 0x2c6   :  { %413 = vmatpush.msrb.mxu1 %v1472_v4 }
 0x2c8   :  { %414 = vmatpush.msrb.mxu1 %v1478_v5 }
 0x2ca   :  { %415 = vmatpush.msrb.mxu1 %v1484_v6 }
 0x2cc   :  { %416 = vmatpush.msrb.mxu1 %v1490_v7 }
 0x33a   :  { %v218_v32 = vpop.f32.mrf.mxu1 }
 0x33b   :  { %v219_v33 = vadd.f32 %v218_v32, %v1542_v11 }
 0x33d   :  { %v221_v34 = vmul.f32 0.01, %v219_v33 }
 0x33f   :  { %v222_v35 = vmax.f32 %v219_v33, %v221_v34 }
 0x341   :  { %1218 = vmatmul.msk.f32.vlgmr.msrb.gmra.mxu2 %vm72_vm0, %v222_v35 }
 0x342   :  { %434 = vmatpush.msrb.mxu2 %v1456_v1 }
 0x344   :  { %435 = vmatpush.msrb.mxu2 %v1454_v0 }
 0x346   :  { %436 = vmatpush.msrb.mxu2 %v1460_v2 }
 0x348   :  { %437 = vmatpush.msrb.mxu2 %v1466_v3 }
 0x34a   :  { %438 = vmatpush.msrb.mxu2 %v1472_v4 }
 0x34c   :  { %439 = vmatpush.msrb.mxu2 %v1478_v5 }
 0x34e   :  { %440 = vmatpush.msrb.mxu2 %v1484_v6 }
 0x350   :  { %441 = vmatpush.msrb.mxu2 %v1490_v7 }
 0x3c4   :  { %v243_v36 = vpop.f32.mrf.mxu2 }
 0x3c5   :  { %v244_v37 = vadd.f32 %v243_v36, %v1542_v11 }
 0x3c7   :  { %v246_v38 = vmul.f32 0.01, %v244_v37 }
 0x3c9   :  { %v247_v39 = vmax.f32 %v244_v37, %v246_v38 }
 0x3cb   :  { %1219 = vmatmul.msk.f32.vlgmr.msrb.gmra.mxu3 %vm72_vm0, %v247_v39 }
 0x3cc   :  { %459 = vmatpush.msrb.mxu3 %v1456_v1 }
 0x3ce   :  { %460 = vmatpush.msrb.mxu3 %v1454_v0 }
 0x3d0   :  { %461 = vmatpush.msrb.mxu3 %v1460_v2 }
 0x3d2   :  { %462 = vmatpush.msrb.mxu3 %v1466_v3 }
 0x3d4   :  { %463 = vmatpush.msrb.mxu3 %v1472_v4 }
 0x3d6   :  { %464 = vmatpush.msrb.mxu3 %v1478_v5 }
 0x3d8   :  { %465 = vmatpush.msrb.mxu3 %v1484_v6 }
 0x3da   :  { %466 = vmatpush.msrb.mxu3 %v1490_v7 }
 0x44e   :  { %v268_v40 = vpop.f32.mrf.mxu3 }
 0x44f   :  { %v269_v41 = vadd.f32 %v268_v40, %v1542_v11 }
 0x451   :  { %v271_v42 = vmul.f32 0.01, %v269_v41 }
 0x453   :  { %v272_v43 = vmax.f32 %v269_v41, %v271_v42 }
 0x455   :  { %1220 = vmatmul.msk.f32.vlgmr.msra.gmra.mxu0 %vm72_vm0, %v272_v43 }
 0x456   :  { %484 = vmatpush.msra.mxu0 %v1456_v1 }
 0x458   :  { %485 = vmatpush.msra.mxu0 %v1454_v0 }
 0x45a   :  { %486 = vmatpush.msra.mxu0 %v1460_v2 }
 0x45c   :  { %487 = vmatpush.msra.mxu0 %v1466_v3 }
 0x45e   :  { %488 = vmatpush.msra.mxu0 %v1472_v4 }
 0x460   :  { %489 = vmatpush.msra.mxu0 %v1478_v5 }
 0x462   :  { %490 = vmatpush.msra.mxu0 %v1484_v6 }
 0x464   :  { %491 = vmatpush.msra.mxu0 %v1490_v7 }
 0x4d2   :  { %v293_v44 = vpop.f32.mrf.mxu0 }
 0x4d3   :  { %v294_v45 = vadd.f32 %v293_v44, %v1542_v11 }
 0x4d5   :  { %v296_v46 = vmul.f32 0.01, %v294_v45 }
 0x4d7   :  { %v297_v47 = vmax.f32 %v294_v45, %v296_v46 }
 0x4d9   :  { %1221 = vmatmul.msk.f32.vlgmr.msra.gmra.mxu1 %vm72_vm0, %v297_v47 }
 0x4da   :  { %509 = vmatpush.msra.mxu1 %v1456_v1 }
 0x4dc   :  { %510 = vmatpush.msra.mxu1 %v1454_v0 }
 0x4de   :  { %511 = vmatpush.msra.mxu1 %v1460_v2 }
 0x4e0   :  { %512 = vmatpush.msra.mxu1 %v1466_v3 }
 0x4e2   :  { %513 = vmatpush.msra.mxu1 %v1472_v4 }
 0x4e4   :  { %514 = vmatpush.msra.mxu1 %v1478_v5 }
 0x4e6   :  { %515 = vmatpush.msra.mxu1 %v1484_v6 }
 0x4e8   :  { %516 = vmatpush.msra.mxu1 %v1490_v7 }
 0x556   :  { %v318_v48 = vpop.f32.mrf.mxu1 }
 0x557   :  { %v319_v49 = vadd.f32 %v318_v48, %v1542_v11 }
 0x559   :  { %v321_v50 = vmul.f32 0.01, %v319_v49 }
 0x55b   :  { %v322_v51 = vmax.f32 %v319_v49, %v321_v50 }
 0x55d   :  { %1222 = vmatmul.msk.f32.vlgmr.msra.gmra.mxu2 %vm72_vm0, %v322_v51 }
 0x55e   :  { %534 = vmatpush.msra.mxu2 %v1456_v1 }
 0x560   :  { %535 = vmatpush.msra.mxu2 %v1454_v0 }
 0x562   :  { %536 = vmatpush.msra.mxu2 %v1460_v2 }
 0x564   :  { %537 = vmatpush.msra.mxu2 %v1466_v3 }
 0x566   :  { %538 = vmatpush.msra.mxu2 %v1472_v4 }
 0x568   :  { %539 = vmatpush.msra.mxu2 %v1478_v5 }
 0x56a   :  { %540 = vmatpush.msra.mxu2 %v1484_v6 }
 0x56c   :  { %541 = vmatpush.msra.mxu2 %v1490_v7 }
 0x5e0   :  { %v343_v52 = vpop.f32.mrf.mxu2 }
 0x5e1   :  { %v344_v53 = vadd.f32 %v343_v52, %v1542_v11 }
 0x5e3   :  { %v346_v54 = vmul.f32 0.01, %v344_v53 }
 0x5e5   :  { %v347_v55 = vmax.f32 %v344_v53, %v346_v54 }
 0x5e7   :  { %1223 = vmatmul.msk.f32.vlgmr.msra.gmra.mxu3 %vm72_vm0, %v347_v55 }
 0x5e8   :  { %559 = vmatpush.msra.mxu3 %v1456_v1 }
 0x5ea   :  { %560 = vmatpush.msra.mxu3 %v1454_v0 }
 0x5ec   :  { %561 = vmatpush.msra.mxu3 %v1460_v2 }
 0x5ee   :  { %562 = vmatpush.msra.mxu3 %v1466_v3 }
 0x5f0   :  { %563 = vmatpush.msra.mxu3 %v1472_v4 }
 0x5f2   :  { %564 = vmatpush.msra.mxu3 %v1478_v5 }
 0x5f4   :  { %565 = vmatpush.msra.mxu3 %v1484_v6 }
 0x5f6   :  { %566 = vmatpush.msra.mxu3 %v1490_v7 }
 0x66a   :  { %v368_v56 = vpop.f32.mrf.mxu3 }
 0x66b   :  { %v369_v57 = vadd.f32 %v368_v56, %v1542_v11 }
 0x66d   :  { %v371_v58 = vmul.f32 0.01, %v369_v57 }
 0x66f   :  { %v372_v59 = vmax.f32 %v369_v57, %v371_v58 }
 0x671   :  { %1224 = vmatmul.msk.f32.vlgmr.msrb.gmra.mxu0 %vm72_vm0, %v372_v59 }
 0x672   :  { %584 = vmatpush.msrb.mxu0 %v1456_v1 }
 0x674   :  { %585 = vmatpush.msrb.mxu0 %v1454_v0 }
 0x676   :  { %586 = vmatpush.msrb.mxu0 %v1460_v2 }
 0x678   :  { %587 = vmatpush.msrb.mxu0 %v1466_v3 }
 0x67a   :  { %588 = vmatpush.msrb.mxu0 %v1472_v4 }
 0x67c   :  { %589 = vmatpush.msrb.mxu0 %v1478_v5 }
 0x67e   :  { %590 = vmatpush.msrb.mxu0 %v1484_v6 }
 0x680   :  { %591 = vmatpush.msrb.mxu0 %v1490_v7 }
 0x6ee   :  { %v393_v60 = vpop.f32.mrf.mxu0 }
 0x6ef   :  { %v394_v61 = vadd.f32 %v393_v60, %v1542_v11 }
 0x6f1   :  { %v396_v62 = vmul.f32 0.01, %v394_v61 }
 0x6f3   :  { %v397_v63 = vmax.f32 %v394_v61, %v396_v62 }
 0x6f5   :  { %1225 = vmatmul.msk.f32.vlgmr.msrb.gmra.mxu1 %vm72_vm0, %v397_v63 }
 0x6f6   :  { %609 = vmatpush.msrb.mxu1 %v1456_v1 }
 0x6f8   :  { %610 = vmatpush.msrb.mxu1 %v1454_v0 }
 0x6fa   :  { %611 = vmatpush.msrb.mxu1 %v1460_v2 }
 0x6fc   :  { %612 = vmatpush.msrb.mxu1 %v1466_v3 }
 0x6fe   :  { %613 = vmatpush.msrb.mxu1 %v1472_v4 }
 0x700   :  { %614 = vmatpush.msrb.mxu1 %v1478_v5 }
 0x702   :  { %615 = vmatpush.msrb.mxu1 %v1484_v6 }
 0x704   :  { %616 = vmatpush.msrb.mxu1 %v1490_v7 }
 0x772   :  { %v418_v8 = vpop.f32.mrf.mxu1 }
 0x773   :  { %v419_v9 = vadd.f32 %v418_v8, %v1542_v11 }
 0x775   :  { %v421_v10 = vmul.f32 0.01, %v419_v9 }
 0x777   :  { %v422_v12 = vmax.f32 %v419_v9, %v421_v10 }
 0x779   :  { %1226 = vmatmul.msk.f32.vlgmr.msrb.gmra.mxu2 %vm72_vm0, %v422_v12 }
 0x77a   :  { %634 = vmatpush.msrb.mxu2 %v1456_v1 }
 0x77c   :  { %635 = vmatpush.msrb.mxu2 %v1454_v0 }
 0x77e   :  { %636 = vmatpush.msrb.mxu2 %v1460_v2 }
 0x780   :  { %637 = vmatpush.msrb.mxu2 %v1466_v3 }
 0x782   :  { %638 = vmatpush.msrb.mxu2 %v1472_v4 }
 0x784   :  { %639 = vmatpush.msrb.mxu2 %v1478_v5 }
 0x786   :  { %640 = vmatpush.msrb.mxu2 %v1484_v6 }
 0x788   :  { %641 = vmatpush.msrb.mxu2 %v1490_v7 }
 0x7fc   :  { %v443_v13 = vpop.f32.mrf.mxu2 }
 0x7fd   :  { %v444_v14 = vadd.f32 %v443_v13, %v1542_v11 }
 0x7ff   :  { %v446_v15 = vmul.f32 0.01, %v444_v14 }
 0x801   :  { %v447_v16 = vmax.f32 %v444_v14, %v446_v15 }
 0x803   :  { %1227 = vmatmul.msk.f32.vlgmr.msrb.gmra.mxu3 %vm72_vm0, %v447_v16 }
 0x804   :  { %659 = vmatpush.msrb.mxu3 %v1456_v1 }
 0x806   :  { %660 = vmatpush.msrb.mxu3 %v1454_v0 }
 0x808   :  { %661 = vmatpush.msrb.mxu3 %v1460_v2 }
 0x80a   :  { %662 = vmatpush.msrb.mxu3 %v1466_v3 }
 0x80c   :  { %663 = vmatpush.msrb.mxu3 %v1472_v4 }
 0x80e   :  { %664 = vmatpush.msrb.mxu3 %v1478_v5 }
 0x810   :  { %665 = vmatpush.msrb.mxu3 %v1484_v6 }
 0x812   :  { %666 = vmatpush.msrb.mxu3 %v1490_v7 }
 0x886   :  { %v468_v17 = vpop.f32.mrf.mxu3 }
 0x887   :  { %v469_v18 = vadd.f32 %v468_v17, %v1542_v11 }
 0x889   :  { %v471_v19 = vmul.f32 0.01, %v469_v18 }
 0x88b   :  { %v472_v20 = vmax.f32 %v469_v18, %v471_v19 }
 0x88d   :  { %1228 = vmatmul.msk.f32.vlgmr.msra.gmra.mxu0 %vm72_vm0, %v472_v20 }
 0x88e   :  { %684 = vmatpush.msra.mxu0 %v1456_v1 }
 0x890   :  { %685 = vmatpush.msra.mxu0 %v1454_v0 }
 0x892   :  { %686 = vmatpush.msra.mxu0 %v1460_v2 }
 0x894   :  { %687 = vmatpush.msra.mxu0 %v1466_v3 }
 0x896   :  { %688 = vmatpush.msra.mxu0 %v1472_v4 }
 0x898   :  { %689 = vmatpush.msra.mxu0 %v1478_v5 }
 0x89a   :  { %690 = vmatpush.msra.mxu0 %v1484_v6 }
 0x89c   :  { %691 = vmatpush.msra.mxu0 %v1490_v7 }
 0x90a   :  { %v493_v21 = vpop.f32.mrf.mxu0 }
 0x90b   :  { %v494_v22 = vadd.f32 %v493_v21, %v1542_v11 }
 0x90d   :  { %v496_v23 = vmul.f32 0.01, %v494_v22 }
 0x90f   :  { %v497_v24 = vmax.f32 %v494_v22, %v496_v23 }
 0x911   :  { %1229 = vmatmul.msk.f32.vlgmr.msra.gmra.mxu1 %vm72_vm0, %v497_v24 }
 0x912   :  { %709 = vmatpush.msra.mxu1 %v1456_v1 }
 0x914   :  { %710 = vmatpush.msra.mxu1 %v1454_v0 }
 0x916   :  { %711 = vmatpush.msra.mxu1 %v1460_v2 }
 0x918   :  { %712 = vmatpush.msra.mxu1 %v1466_v3 }
 0x91a   :  { %713 = vmatpush.msra.mxu1 %v1472_v4 }
 0x91c   :  { %714 = vmatpush.msra.mxu1 %v1478_v5 }
 0x91e   :  { %715 = vmatpush.msra.mxu1 %v1484_v6 }
 0x920   :  { %716 = vmatpush.msra.mxu1 %v1490_v7 }
 0x98e   :  { %v518_v25 = vpop.f32.mrf.mxu1 }
 0x98f   :  { %v519_v26 = vadd.f32 %v518_v25, %v1542_v11 }
 0x991   :  { %v521_v27 = vmul.f32 0.01, %v519_v26 }
 0x993   :  { %v522_v28 = vmax.f32 %v519_v26, %v521_v27 }
 0x995   :  { %1230 = vmatmul.msk.f32.vlgmr.msra.gmra.mxu2 %vm72_vm0, %v522_v28 }
 0x996   :  { %734 = vmatpush.msra.mxu2 %v1456_v1 }
 0x998   :  { %735 = vmatpush.msra.mxu2 %v1454_v0 }
 0x99a   :  { %736 = vmatpush.msra.mxu2 %v1460_v2 }
 0x99c   :  { %737 = vmatpush.msra.mxu2 %v1466_v3 }
 0x99e   :  { %738 = vmatpush.msra.mxu2 %v1472_v4 }
 0x9a0   :  { %739 = vmatpush.msra.mxu2 %v1478_v5 }
 0x9a2   :  { %740 = vmatpush.msra.mxu2 %v1484_v6 }
 0x9a4   :  { %741 = vmatpush.msra.mxu2 %v1490_v7 }
 0xa18   :  { %v543_v29 = vpop.f32.mrf.mxu2 }
 0xa19   :  { %v544_v30 = vadd.f32 %v543_v29, %v1542_v11 }
 0xa1b   :  { %v546_v31 = vmul.f32 0.01, %v544_v30 }
 0xa1d   :  { %v547_v32 = vmax.f32 %v544_v30, %v546_v31 }
 0xa1f   :  { %1231 = vmatmul.msk.f32.vlgmr.msra.gmra.mxu3 %vm72_vm0, %v547_v32 }
 0xa20   :  { %759 = vmatpush.msra.mxu3 %v1456_v1 }
 0xa22   :  { %760 = vmatpush.msra.mxu3 %v1454_v0 }
 0xa24   :  { %761 = vmatpush.msra.mxu3 %v1460_v2 }
 0xa26   :  { %762 = vmatpush.msra.mxu3 %v1466_v3 }
 0xa28   :  { %763 = vmatpush.msra.mxu3 %v1472_v4 }
 0xa2a   :  { %764 = vmatpush.msra.mxu3 %v1478_v5 }
 0xa2c   :  { %765 = vmatpush.msra.mxu3 %v1484_v6 }
 0xa2e   :  { %766 = vmatpush.msra.mxu3 %v1490_v7 }
 0xaa2   :  { %v568_v33 = vpop.f32.mrf.mxu3 }
 0xaa3   :  { %v569_v34 = vadd.f32 %v568_v33, %v1542_v11 }
 0xaa5   :  { %v571_v35 = vmul.f32 0.01, %v569_v34 }
 0xaa7   :  { %v572_v36 = vmax.f32 %v569_v34, %v571_v35 }
 0xaa9   :  { %1232 = vmatmul.msk.f32.vlgmr.msrb.gmra.mxu0 %vm72_vm0, %v572_v36 }
 0xaaa   :  { %784 = vmatpush.msrb.mxu0 %v1456_v1 }
 0xaac   :  { %785 = vmatpush.msrb.mxu0 %v1454_v0 }
 0xaae   :  { %786 = vmatpush.msrb.mxu0 %v1460_v2 }
 0xab0   :  { %787 = vmatpush.msrb.mxu0 %v1466_v3 }
 0xab2   :  { %788 = vmatpush.msrb.mxu0 %v1472_v4 }
 0xab4   :  { %789 = vmatpush.msrb.mxu0 %v1478_v5 }
 0xab6   :  { %790 = vmatpush.msrb.mxu0 %v1484_v6 }
 0xab8   :  { %791 = vmatpush.msrb.mxu0 %v1490_v7 }
 0xb26   :  { %v593_v37 = vpop.f32.mrf.mxu0 }
 0xb27   :  { %v594_v38 = vadd.f32 %v593_v37, %v1542_v11 }
 0xb29   :  { %v596_v39 = vmul.f32 0.01, %v594_v38 }
 0xb2b   :  { %v597_v40 = vmax.f32 %v594_v38, %v596_v39 }
 0xb2d   :  { %1233 = vmatmul.msk.f32.vlgmr.msrb.gmra.mxu1 %vm72_vm0, %v597_v40 }
 0xb2e   :  { %809 = vmatpush.msrb.mxu1 %v1456_v1 }
 0xb30   :  { %810 = vmatpush.msrb.mxu1 %v1454_v0 }
 0xb32   :  { %811 = vmatpush.msrb.mxu1 %v1460_v2 }
 0xb34   :  { %812 = vmatpush.msrb.mxu1 %v1466_v3 }
 0xb36   :  { %813 = vmatpush.msrb.mxu1 %v1472_v4 }
 0xb38   :  { %814 = vmatpush.msrb.mxu1 %v1478_v5 }
 0xb3a   :  { %815 = vmatpush.msrb.mxu1 %v1484_v6 }
 0xb3c   :  { %816 = vmatpush.msrb.mxu1 %v1490_v7 }
 0xbaa   :  { %v618_v41 = vpop.f32.mrf.mxu1 }
 0xbab   :  { %v619_v42 = vadd.f32 %v618_v41, %v1542_v11 }
 0xbad   :  { %v621_v43 = vmul.f32 0.01, %v619_v42 }
 0xbaf   :  { %v622_v44 = vmax.f32 %v619_v42, %v621_v43 }
 0xbb1   :  { %1234 = vmatmul.msk.f32.vlgmr.msrb.gmra.mxu2 %vm72_vm0, %v622_v44 }
 0xbb2   :  { %834 = vmatpush.msrb.mxu2 %v1456_v1 }
 0xbb4   :  { %835 = vmatpush.msrb.mxu2 %v1454_v0 }
 0xbb6   :  { %836 = vmatpush.msrb.mxu2 %v1460_v2 }
 0xbb8   :  { %837 = vmatpush.msrb.mxu2 %v1466_v3 }
 0xbba   :  { %838 = vmatpush.msrb.mxu2 %v1472_v4 }
 0xbbc   :  { %839 = vmatpush.msrb.mxu2 %v1478_v5 }
 0xbbe   :  { %840 = vmatpush.msrb.mxu2 %v1484_v6 }
 0xbc0   :  { %841 = vmatpush.msrb.mxu2 %v1490_v7 }
 0xc34   :  { %v643_v45 = vpop.f32.mrf.mxu2 }
 0xc35   :  { %v644_v46 = vadd.f32 %v643_v45, %v1542_v11 }
 0xc37   :  { %v646_v47 = vmul.f32 0.01, %v644_v46 }
 0xc39   :  { %v647_v48 = vmax.f32 %v644_v46, %v646_v47 }
 0xc3b   :  { %1235 = vmatmul.msk.f32.vlgmr.msrb.gmra.mxu3 %vm72_vm0, %v647_v48 }
 0xc3c   :  { %859 = vmatpush.msrb.mxu3 %v1456_v1 }
 0xc3e   :  { %860 = vmatpush.msrb.mxu3 %v1454_v0 }
 0xc40   :  { %861 = vmatpush.msrb.mxu3 %v1460_v2 }
 0xc42   :  { %862 = vmatpush.msrb.mxu3 %v1466_v3 }
 0xc44   :  { %863 = vmatpush.msrb.mxu3 %v1472_v4 }
 0xc46   :  { %864 = vmatpush.msrb.mxu3 %v1478_v5 }
 0xc48   :  { %865 = vmatpush.msrb.mxu3 %v1484_v6 }
 0xc4a   :  { %866 = vmatpush.msrb.mxu3 %v1490_v7 }
 0xcbe   :  { %v668_v49 = vpop.f32.mrf.mxu3 }
 0xcbf   :  { %v669_v50 = vadd.f32 %v668_v49, %v1542_v11 }
 0xcc1   :  { %v671_v51 = vmul.f32 0.01, %v669_v50 }
 0xcc3   :  { %v672_v52 = vmax.f32 %v669_v50, %v671_v51 }
 0xcc5   :  { %1236 = vmatmul.msk.f32.vlgmr.msra.gmra.mxu0 %vm72_vm0, %v672_v52 }
 0xcc6   :  { %884 = vmatpush.msra.mxu0 %v1456_v1 }
 0xcc8   :  { %885 = vmatpush.msra.mxu0 %v1454_v0 }
 0xcca   :  { %886 = vmatpush.msra.mxu0 %v1460_v2 }
 0xccc   :  { %887 = vmatpush.msra.mxu0 %v1466_v3 }
 0xcce   :  { %888 = vmatpush.msra.mxu0 %v1472_v4 }
 0xcd0   :  { %889 = vmatpush.msra.mxu0 %v1478_v5 }
 0xcd2   :  { %890 = vmatpush.msra.mxu0 %v1484_v6 }
 0xcd4   :  { %891 = vmatpush.msra.mxu0 %v1490_v7 }
 0xd42   :  { %v693_v53 = vpop.f32.mrf.mxu0 }
 0xd43   :  { %v694_v54 = vadd.f32 %v693_v53, %v1542_v11 }
 0xd45   :  { %v696_v55 = vmul.f32 0.01, %v694_v54 }
 0xd47   :  { %v697_v56 = vmax.f32 %v694_v54, %v696_v55 }
 0xd49   :  { %1237 = vmatmul.msk.f32.vlgmr.msra.gmra.mxu1 %vm72_vm0, %v697_v56 }
 0xd4a   :  { %909 = vmatpush.msra.mxu1 %v1456_v1 }
 0xd4c   :  { %910 = vmatpush.msra.mxu1 %v1454_v0 }
 0xd4e   :  { %911 = vmatpush.msra.mxu1 %v1460_v2 }
 0xd50   :  { %912 = vmatpush.msra.mxu1 %v1466_v3 }
 0xd52   :  { %913 = vmatpush.msra.mxu1 %v1472_v4 }
 0xd54   :  { %914 = vmatpush.msra.mxu1 %v1478_v5 }
 0xd56   :  { %915 = vmatpush.msra.mxu1 %v1484_v6 }
 0xd58   :  { %916 = vmatpush.msra.mxu1 %v1490_v7 }
 0xdc6   :  { %v718_v57 = vpop.f32.mrf.mxu1 }
 0xdc7   :  { %v719_v58 = vadd.f32 %v718_v57, %v1542_v11 }
 0xdc9   :  { %v721_v59 = vmul.f32 0.01, %v719_v58 }
 0xdcb   :  { %v722_v60 = vmax.f32 %v719_v58, %v721_v59 }
 0xdcd   :  { %1238 = vmatmul.msk.f32.vlgmr.msra.gmra.mxu2 %vm72_vm0, %v722_v60 }
 0xdce   :  { %934 = vmatpush.msra.mxu2 %v1456_v1 }
 0xdd0   :  { %935 = vmatpush.msra.mxu2 %v1454_v0 }
 0xdd2   :  { %936 = vmatpush.msra.mxu2 %v1460_v2 }
 0xdd4   :  { %937 = vmatpush.msra.mxu2 %v1466_v3 }
 0xdd6   :  { %938 = vmatpush.msra.mxu2 %v1472_v4 }
 0xdd8   :  { %939 = vmatpush.msra.mxu2 %v1478_v5 }
 0xdda   :  { %940 = vmatpush.msra.mxu2 %v1484_v6 }
 0xddc   :  { %941 = vmatpush.msra.mxu2 %v1490_v7 }
 0xe50   :  { %v743_v61 = vpop.f32.mrf.mxu2 }
 0xe51   :  { %v744_v62 = vadd.f32 %v743_v61, %v1542_v11 }
 0xe53   :  { %v746_v63 = vmul.f32 0.01, %v744_v62 }
 0xe55   :  { %v747_v8 = vmax.f32 %v744_v62, %v746_v63 }
 0xe57   :  { %1239 = vmatmul.msk.f32.vlgmr.msra.gmra.mxu3 %vm72_vm0, %v747_v8 }
 0xe58   :  { %959 = vmatpush.msra.mxu3 %v1456_v1 }
 0xe5a   :  { %960 = vmatpush.msra.mxu3 %v1454_v0 }
 0xe5c   :  { %961 = vmatpush.msra.mxu3 %v1460_v2 }
 0xe5e   :  { %962 = vmatpush.msra.mxu3 %v1466_v3 }
 0xe60   :  { %963 = vmatpush.msra.mxu3 %v1472_v4 }
 0xe62   :  { %964 = vmatpush.msra.mxu3 %v1478_v5 }
 0xe64   :  { %965 = vmatpush.msra.mxu3 %v1484_v6 }
 0xe66   :  { %966 = vmatpush.msra.mxu3 %v1490_v7 }
 0xeda   :  { %v768_v9 = vpop.f32.mrf.mxu3 }
 0xedb   :  { %v769_v10 = vadd.f32 %v768_v9, %v1542_v11 }
 0xedd   :  { %v771_v12 = vmul.f32 0.01, %v769_v10 }
 0xedf   :  { %v772_v13 = vmax.f32 %v769_v10, %v771_v12 }
 0xee1   :  { %1240 = vmatmul.msk.f32.vlgmr.msrb.gmra.mxu0 %vm72_vm0, %v772_v13 }
 0xee2   :  { %984 = vmatpush.msrb.mxu0 %v1456_v1 }
 0xee4   :  { %985 = vmatpush.msrb.mxu0 %v1454_v0 }
 0xee6   :  { %986 = vmatpush.msrb.mxu0 %v1460_v2 }
 0xee8   :  { %987 = vmatpush.msrb.mxu0 %v1466_v3 }
 0xeea   :  { %988 = vmatpush.msrb.mxu0 %v1472_v4 }
 0xeec   :  { %989 = vmatpush.msrb.mxu0 %v1478_v5 }
 0xeee   :  { %990 = vmatpush.msrb.mxu0 %v1484_v6 }
 0xef0   :  { %991 = vmatpush.msrb.mxu0 %v1490_v7 }
 0xf5e   :  { %v793_v14 = vpop.f32.mrf.mxu0 }
 0xf5f   :  { %v794_v15 = vadd.f32 %v793_v14, %v1542_v11 }
 0xf61   :  { %v796_v16 = vmul.f32 0.01, %v794_v15 }
 0xf63   :  { %v797_v17 = vmax.f32 %v794_v15, %v796_v16 }
 0xf65   :  { %1241 = vmatmul.msk.f32.vlgmr.msrb.gmra.mxu1 %vm72_vm0, %v797_v17 }
 0xf66   :  { %1009 = vmatpush.msrb.mxu1 %v1456_v1 }
 0xf68   :  { %1010 = vmatpush.msrb.mxu1 %v1454_v0 }
 0xf6a   :  { %1011 = vmatpush.msrb.mxu1 %v1460_v2 }
 0xf6c   :  { %1012 = vmatpush.msrb.mxu1 %v1466_v3 }
 0xf6e   :  { %1013 = vmatpush.msrb.mxu1 %v1472_v4 }
 0xf70   :  { %1014 = vmatpush.msrb.mxu1 %v1478_v5 }
 0xf72   :  { %1015 = vmatpush.msrb.mxu1 %v1484_v6 }
 0xf74   :  { %1016 = vmatpush.msrb.mxu1 %v1490_v7 }
 0xfe2   :  { %v818_v18 = vpop.f32.mrf.mxu1 }
 0xfe3   :  { %v819_v19 = vadd.f32 %v818_v18, %v1542_v11 }
 0xfe5   :  { %v821_v20 = vmul.f32 0.01, %v819_v19 }
 0xfe7   :  { %v822_v21 = vmax.f32 %v819_v19, %v821_v20 }
 0xfe9   :  { %1242 = vmatmul.msk.f32.vlgmr.msrb.gmra.mxu2 %vm72_vm0, %v822_v21 }
 0xfea   :  { %1034 = vmatpush.msrb.mxu2 %v1456_v1 }
 0xfec   :  { %1035 = vmatpush.msrb.mxu2 %v1454_v0 }
 0xfee   :  { %1036 = vmatpush.msrb.mxu2 %v1460_v2 }
 0xff0   :  { %1037 = vmatpush.msrb.mxu2 %v1466_v3 }
 0xff2   :  { %1038 = vmatpush.msrb.mxu2 %v1472_v4 }
 0xff4   :  { %1039 = vmatpush.msrb.mxu2 %v1478_v5 }
 0xff6   :  { %1040 = vmatpush.msrb.mxu2 %v1484_v6 }
 0xff8   :  { %1041 = vmatpush.msrb.mxu2 %v1490_v7 }
0x106c   :  { %v843_v22 = vpop.f32.mrf.mxu2 }
0x106d   :  { %v844_v23 = vadd.f32 %v843_v22, %v1542_v11 }
0x106f   :  { %v846_v24 = vmul.f32 0.01, %v844_v23 }
0x1071   :  { %v847_v25 = vmax.f32 %v844_v23, %v846_v24 }
0x1073   :  { %1243 = vmatmul.msk.f32.vlgmr.msrb.gmra.mxu3 %vm72_vm0, %v847_v25 }
0x1074   :  { %1059 = vmatpush.msrb.mxu3 %v1456_v1 }
0x1076   :  { %1060 = vmatpush.msrb.mxu3 %v1454_v0 }
0x1078   :  { %1061 = vmatpush.msrb.mxu3 %v1460_v2 }
0x107a   :  { %1062 = vmatpush.msrb.mxu3 %v1466_v3 }
0x107c   :  { %1063 = vmatpush.msrb.mxu3 %v1472_v4 }
0x107e   :  { %1064 = vmatpush.msrb.mxu3 %v1478_v5 }
0x1080   :  { %1065 = vmatpush.msrb.mxu3 %v1484_v6 }
0x1082   :  { %1066 = vmatpush.msrb.mxu3 %v1490_v7 }
0x10f6   :  { %v868_v26 = vpop.f32.mrf.mxu3 }
0x10f7   :  { %v869_v27 = vadd.f32 %v868_v26, %v1542_v11 }
0x10f9   :  { %v871_v28 = vmul.f32 0.01, %v869_v27 }
0x10fb   :  { %v872_v29 = vmax.f32 %v869_v27, %v871_v28 }
0x10fd   :  { %1244 = vmatmul.msk.f32.vlgmr.msra.gmra.mxu0 %vm72_vm0, %v872_v29 }
0x10fe   :  { %1084 = vmatpush.msra.mxu0 %v1456_v1 }
0x1100   :  { %1085 = vmatpush.msra.mxu0 %v1454_v0 }
0x1102   :  { %1086 = vmatpush.msra.mxu0 %v1460_v2 }
0x1104   :  { %1087 = vmatpush.msra.mxu0 %v1466_v3 }
0x1106   :  { %1088 = vmatpush.msra.mxu0 %v1472_v4 }
0x1108   :  { %1089 = vmatpush.msra.mxu0 %v1478_v5 }
0x110a   :  { %1090 = vmatpush.msra.mxu0 %v1484_v6 }
0x110c   :  { %1091 = vmatpush.msra.mxu0 %v1490_v7 }
0x117a   :  { %v893_v30 = vpop.f32.mrf.mxu0 }
0x117b   :  { %v894_v31 = vadd.f32 %v893_v30, %v1542_v11 }
0x117d   :  { %v896_v32 = vmul.f32 0.01, %v894_v31 }
0x117f   :  { %v897_v33 = vmax.f32 %v894_v31, %v896_v32 }
0x1181   :  { %1245 = vmatmul.msk.f32.vlgmr.msra.gmra.mxu1 %vm72_vm0, %v897_v33 }
0x1182   :  { %1109 = vmatpush.msra.mxu1 %v1456_v1 }
0x1184   :  { %1110 = vmatpush.msra.mxu1 %v1454_v0 }
0x1186   :  { %1111 = vmatpush.msra.mxu1 %v1460_v2 }
0x1188   :  { %1112 = vmatpush.msra.mxu1 %v1466_v3 }
0x118a   :  { %1113 = vmatpush.msra.mxu1 %v1472_v4 }
0x118c   :  { %1114 = vmatpush.msra.mxu1 %v1478_v5 }
0x118e   :  { %1115 = vmatpush.msra.mxu1 %v1484_v6 }
0x1190   :  { %1116 = vmatpush.msra.mxu1 %v1490_v7 }
0x11fe   :  { %v918_v34 = vpop.f32.mrf.mxu1 }
0x11ff   :  { %v919_v35 = vadd.f32 %v918_v34, %v1542_v11 }
0x1201   :  { %v921_v36 = vmul.f32 0.01, %v919_v35 }
0x1203   :  { %v922_v37 = vmax.f32 %v919_v35, %v921_v36 }
0x1205   :  { %1246 = vmatmul.msk.f32.vlgmr.msra.gmra.mxu2 %vm72_vm0, %v922_v37 }
0x1288   :  { %v943_v38 = vpop.f32.mrf.mxu2 }
0x1289   :  { %v944_v39 = vadd.f32 %v943_v38, %v1542_v11 }
0x128b   :  { %v946_v40 = vmul.f32 0.01, %v944_v39 }
0x128d   :  { %v947_v41 = vmax.f32 %v944_v39, %v946_v40 }
0x128f   :  { %1247 = vmatmul.msk.f32.vlgmr.msra.gmra.mxu3 %vm72_vm0, %v947_v41 }
0x1312   :  { %v968_v42 = vpop.f32.mrf.mxu3 }
0x1313   :  { %v969_v43 = vadd.f32 %v968_v42, %v1542_v11 }
0x1315   :  { %v971_v44 = vmul.f32 0.01, %v969_v43 }
0x1317   :  { %v972_v45 = vmax.f32 %v969_v43, %v971_v44 }
0x1319   :  { %1248 = vmatmul.msk.f32.vlgmr.msrb.gmra.mxu0 %vm72_vm0, %v972_v45 }
0x1396   :  { %v993_v46 = vpop.f32.mrf.mxu0 }
0x1397   :  { %v994_v47 = vadd.f32 %v993_v46, %v1542_v11 }
0x1399   :  { %v996_v48 = vmul.f32 0.01, %v994_v47 }
0x139b   :  { %v997_v49 = vmax.f32 %v994_v47, %v996_v48 }
0x139d   :  { %1249 = vmatmul.msk.f32.vlgmr.msrb.gmra.mxu1 %vm72_vm0, %v997_v49 }
0x141a   :  { %v1018_v50 = vpop.f32.mrf.mxu1 }
0x141b   :  { %v1019_v51 = vadd.f32 %v1018_v50, %v1542_v11 }
0x141d   :  { %v1021_v52 = vmul.f32 0.01, %v1019_v51 }
0x141f   :  { %v1022_v53 = vmax.f32 %v1019_v51, %v1021_v52 }
0x1421   :  { %1250 = vmatmul.msk.f32.vlgmr.msrb.gmra.mxu2 %vm72_vm0, %v1022_v53 }
0x14a4   :  { %v1043_v54 = vpop.f32.mrf.mxu2 }
0x14a5   :  { %v1044_v55 = vadd.f32 %v1043_v54, %v1542_v11 }
0x14a7   :  { %v1046_v56 = vmul.f32 0.01, %v1044_v55 }
0x14a9   :  { %v1047_v57 = vmax.f32 %v1044_v55, %v1046_v56 }
0x14ab   :  { %1251 = vmatmul.msk.f32.vlgmr.msrb.gmra.mxu3 %vm72_vm0, %v1047_v57 }
0x152e   :  { %v1068_v58 = vpop.f32.mrf.mxu3 }
0x152f   :  { %v1069_v59 = vadd.f32 %v1068_v58, %v1542_v11 }
0x1531   :  { %v1071_v60 = vmul.f32 0.01, %v1069_v59 }
0x1533   :  { %v1072_v61 = vmax.f32 %v1069_v59, %v1071_v60 }
0x1535   :  { %1252 = vmatmul.msk.f32.vlgmr.msra.gmra.mxu0 %vm72_vm0, %v1072_v61 }
0x15b2   :  { %v1093_v62 = vpop.f32.mrf.mxu0 }
0x15b3   :  { %v1094_v63 = vadd.f32 %v1093_v62, %v1542_v11 }
0x15b5   :  { %v1096_v8 = vmul.f32 0.01, %v1094_v63 }
0x15b7   :  { %v1097_v9 = vmax.f32 %v1094_v63, %v1096_v8 }
0x15b9   :  { %1253 = vmatmul.msk.f32.vlgmr.msra.gmra.mxu1 %vm72_vm0, %v1097_v9 }
0x1636   :  { %v1118_v10 = vpop.f32.mrf.mxu1 }
0x1637   :  { %v1119_v12 = vadd.f32 %v1118_v10, %v1542_v11 }
0x1639   :  { %v1121_v13 = vmul.f32 0.01, %v1119_v12 }
0x163b   :  { %v1122_v14 = vmax.f32 %v1119_v12, %v1121_v13  }
0x163d   :  { %v1193_v15 = vsub.f32 %v1122_v14, %v1097_v9  ;;  %v1414_v25 = vmov %v1122_v14  }
0x163f   :  { %v1194_v16 = vand.u32 2147483647, %v1193_v15 }
0x1641   :  { %v1195_v17 = vsel %vm72_vm0, %v1194_v16, 0.0 }
0x1642   :  { %1196 = vadd.xlane.f32.xlu0 %v1195_v17 }
0x16b5   :  { %v1197_v18 = vpop.xlane.xlu0 %1196 }
0x16b6   :  { %v1198_v19 = vrot.slane %v1197_v18, 4 }
0x16b8   :  { %v1199_v20 = vadd.f32 %v1198_v19, %v1197_v18 }
0x16ba   :  { %v1200_v21 = vrot.slane %v1199_v20, 2 }
0x16bc   :  { %v1201_v22 = vadd.f32 %v1200_v21, %v1199_v20 }
0x16be   :  { %v1202_v23 = vrot.slane %v1201_v22, 1 }
0x16c0   :  { %v1203_v24 = vadd.f32 %v1202_v23, %v1201_v22 }
0x16c2   :  { %1256 = vpush %v1203_v24 }
0x16f3   :  { %s1257_s0 = spop %1256 }
0x16f4   :  { %p1206_p0 = scmp.ge.f32.partialorder %s1257_s0, 1e-06 }
0x16f5   :  { %v1406_v26 = vmov (%p1206_p0), %v1122_v14   ;;  %s1892_s2 = smov (%p1206_p0), 42  }
0x16f6   :  { %1208 = sbr.rel (!%p1206_p0) target bundleno = 6222 (0x184e), region = 45 }
0x16fb LB: > { %1157 = vmatpush.msra.mxu0 %v1456_v1  ;;  %s1145_s2 = sadd.s32 1, %s1412_s2   ;;  %s1412_s2 = sphi %s1892_s2, %s1145_s2   ;;  %v1408_v26 = vphi %v1406_v26, %v1407_v26  }
0x16fc   : > { %p1139_p1 = scmp.lt.s32.totalorder %s1145_s2, 60 }
0x16fd   : > { %1158 = vmatpush.msra.mxu0 %v1454_v0 }
0x16ff   : > { %1159 = vmatpush.msra.mxu0 %v1460_v2 }
0x1701   : > { %1160 = vmatpush.msra.mxu0 %v1466_v3 }
0x1703   : > { %1161 = vmatpush.msra.mxu0 %v1472_v4 }
0x1705   : > { %1162 = vmatpush.msra.mxu0 %v1478_v5 }
0x1707   : > { %1163 = vmatpush.msra.mxu0 %v1484_v6 }
0x1709   : > { %1164 = vmatpush.msra.mxu0 %v1490_v7 }
0x170a   : > { %1255 = vmatmul.msk.f32.vlgmr.msra.gmra.mxu0 %vm72_vm0, %v1408_v26 }
0x1787   : > { %v1166_v27 = vpop.f32.mrf.mxu0 }
0x1788   : > { %v1167_v28 = vadd.f32 %v1166_v27, %v1542_v11 }
0x178a   : > { %v1169_v29 = vmul.f32 0.01, %v1167_v28 }
0x178c   : > { %v1170_v30 = vmax.f32 %v1167_v28, %v1169_v29  }
0x178e   : > { %v1127_v31 = vsub.f32 %v1170_v30, %v1408_v26  ;;  %v1407_v26 = vmov %v1170_v30  }
0x1790   : > { %v1128_v32 = vand.u32 2147483647, %v1127_v31 }
0x1792   : > { %v1129_v33 = vsel %vm72_vm0, %v1128_v32, 0.0 }
0x1793   : > { %1130 = vadd.xlane.f32.xlu0 %v1129_v33 }
0x1806   : > { %v1131_v34 = vpop.xlane.xlu0 %1130 }
0x1807   : > { %v1132_v35 = vrot.slane %v1131_v34, 4 }
0x1809   : > { %v1133_v36 = vadd.f32 %v1132_v35, %v1131_v34 }
0x180b   : > { %v1134_v37 = vrot.slane %v1133_v36, 2 }
0x180d   : > { %v1135_v38 = vadd.f32 %v1134_v37, %v1133_v36 }
0x180f   : > { %v1136_v39 = vrot.slane %v1135_v38, 1 }
0x1811   : > { %v1137_v40 = vadd.f32 %v1136_v39, %v1135_v38 }
0x1813   : > { %1258 = vpush %v1137_v40 }
0x1844   : > { %s1259_s28 = spop %1258 }
0x1845   : > { %p1140_p2 = scmp.ge.f32.partialorder %s1259_s28, 1e-06 }
0x1847   : > { %p1141_p3 = pnand %p1140_p2, %p1139_p1 }
0x1848   :  { %v1415_v25 = vmov (%p1141_p3), %v1170_v30  }
0x1849   :  { %1144 = sbr.rel (!%p1141_p3) target bundleno = 5883 (0x16fb), region = 51 }
0x184e PF:  { %1171 = vst.msk [vmem:[#allocation8] sm:$0xff] %vm72_vm0, %v1416_v25  ;;  %s1179_s4 = sshll.u32 %s1918_s3, 4  ;;  %s1424_s5 = smov [#allocation8]   ;;  %v1416_v25 = vphi %v1414_v25, %v1415_v25   ;;  %s1180_s4 = int_to_ptr.hbm [resolvable:$true] %s1179_s4 }
0x184f   :  { %s1177_s6 = sshll.u32 %s1424_s5, 4  ;;  %s1178_s6 = int_to_ptr.vmem [resolvable:$true] %s1177_s6 }
0x1850   :  { %1182 = dma.vmem_to_hbm [thread:$0]  %s1178_s6, 128, %s1180_s4, [#allocation4]  }
0x1851   :  { %1404 = dma.done.wait [#allocation4], 128  }
0x1852   :  { %1405 = vsyncadd [#allocation4], 4294967168 }
0x1853   :  { %1187 = vsyncpa [#allocation3], 1 }
0x1854   :  { %1188 = vsyncpa [#allocation6], 1 }
0x1855   :  { %1189 = vsyncpa [#allocation4], 1 }

</bundles_post_ra>
